<compile_context>
chip_gen: v7x
topology: tpu7x:2x2x1
jax: 0.10.0
libtpu: 0.0.40
codegen_flags: <defaults>
</compile_context>

<pallas_src>
import functools

import jax
import jax.numpy as jnp
import numpy as np
from jax import lax
from jax.experimental import pallas as pl
from jax.experimental.pallas import tpu as pltpu


def _round_up(x, m):
    return ((x + m - 1) // m) * m


def _cdiv(a, b):
    return -(-a // b)


def _choose_tiles(m_rows, target_rows=512):
    """Even tile count (v7x has 2 TCs), tm a multiple of 8, minimal padding."""
    n = _round_up(max(2, _cdiv(m_rows, target_rows)), 2)
    tm = _round_up(_cdiv(m_rows, n), 8)
    return tm, n


# ---------------------------------------------------------------------------
# Kernel 1a: fused complex matmul + last-layer activation  z/(|z|+1e-8)*tanh|z|
# ---------------------------------------------------------------------------
def _cconvt_last_kernel(p_ref, w_ref, b_ref, o_ref):
    acc = jnp.dot(p_ref[...], w_ref[...], preferred_element_type=jnp.float32)
    z = acc + b_ref[...]
    a = jnp.abs(z)
    phase = z * pl.reciprocal(a + 1e-8, approx=True)
    o_ref[...] = (phase * jnp.tanh(a)).astype(o_ref.dtype)


# ---------------------------------------------------------------------------
# Kernel 1b: fused complex matmul + masked per-tile partial BN statistics
# ---------------------------------------------------------------------------
def _cconvt_stats_kernel(p_ref, w_ref, b_ref, y_ref, s_ref, q_ref, *, tm, m_valid):
    acc = jnp.dot(p_ref[...], w_ref[...], preferred_element_type=jnp.float32)
    z = acc + b_ref[...]
    y_ref[...] = z
    # Padded rows contain bias values (not zeros) -> mask them out of the stats.
    row = pl.program_id(0) * tm + lax.broadcasted_iota(jnp.int32, (tm, 1), 0)
    zm = jnp.where(row < m_valid, z, 0.0)
    s = jnp.sum(zm, axis=0, keepdims=True)            # (1, C2p)
    q = jnp.sum(zm * zm, axis=0, keepdims=True)        # (1, C2p)
    row0 = lax.broadcasted_iota(jnp.int32, (8, 1), 0) == 0
    s_ref[...] = jnp.where(row0, s, 0.0)                # (8, C2p), data in row 0
    q_ref[...] = jnp.where(row0, q, 0.0)


def _fused_cmatmul(patches, w_fused, b_fused, *, tm, m_valid, last_layer, out_dtype):
    """patches (Mp,K2p) bf16; w_fused (K2p,C2p) bf16; b_fused (1,C2p) f32."""
    mp, k2p = patches.shape
    c2p = w_fused.shape[1]
    grid_m = mp // tm
    in_specs = [
        pl.BlockSpec((tm, k2p), lambda i: (i, 0)),     # fused patch tile
        pl.BlockSpec((k2p, c2p), lambda i: (0, 0)),    # fused weight (resident)
        pl.BlockSpec((1, c2p), lambda i: (0, 0)),      # pre-combined bias row
    ]
    cparams = pltpu.CompilerParams(
        dimension_semantics=("parallel",),
        vmem_limit_bytes=32 * 1024 * 1024)

    if last_layer:
        return pl.pallas_call(
            _cconvt_last_kernel,
            out_shape=jax.ShapeDtypeStruct((mp, c2p), out_dtype),
            grid_spec=pltpu.PrefetchScalarGridSpec(
                num_scalar_prefetch=0, grid=(grid_m,),
                in_specs=in_specs,
                out_specs=pl.BlockSpec((tm, c2p), lambda i: (i, 0))),
            compiler_params=cparams,
        )(patches, w_fused, b_fused)

    kernel = functools.partial(_cconvt_stats_kernel, tm=tm, m_valid=m_valid)
    return pl.pallas_call(
        kernel,
        out_shape=(jax.ShapeDtypeStruct((mp, c2p), jnp.float32),
                   jax.ShapeDtypeStruct((grid_m * 8, c2p), jnp.float32),
                   jax.ShapeDtypeStruct((grid_m * 8, c2p), jnp.float32)),
        grid_spec=pltpu.PrefetchScalarGridSpec(
            num_scalar_prefetch=0, grid=(grid_m,),
            in_specs=in_specs,
            out_specs=(pl.BlockSpec((tm, c2p), lambda i: (i, 0)),
                       pl.BlockSpec((8, c2p), lambda i: (i, 0)),
                       pl.BlockSpec((8, c2p), lambda i: (i, 0)))),
        compiler_params=cparams,
    )(patches, w_fused, b_fused)


# ---------------------------------------------------------------------------
# Kernel 2: fused BatchNorm affine (per-column scale/shift) + LeakyReLU
# ---------------------------------------------------------------------------
def _bn_lrelu_kernel(y_ref, sc_ref, sh_ref, o_ref, *, negative_slope):
    z = y_ref[...] * sc_ref[...] + sh_ref[...]
    o_ref[...] = jnp.where(z >= 0, z, negative_slope * z).astype(o_ref.dtype)


def _bn_lrelu_apply(y, scale, shift, *, tm, negative_slope, out_dtype):
    mp, c2p = y.shape
    grid_m = mp // tm
    return pl.pallas_call(
        functools.partial(_bn_lrelu_kernel, negative_slope=negative_slope),
        out_shape=jax.ShapeDtypeStruct((mp, c2p), out_dtype),
        grid_spec=pltpu.PrefetchScalarGridSpec(
            num_scalar_prefetch=0, grid=(grid_m,),
            in_specs=[pl.BlockSpec((tm, c2p), lambda i: (i, 0)),
                      pl.BlockSpec((1, c2p), lambda i: (0, 0)),
                      pl.BlockSpec((1, c2p), lambda i: (0, 0))],
            out_specs=pl.BlockSpec((tm, c2p), lambda i: (i, 0))),
        compiler_params=pltpu.CompilerParams(
            dimension_semantics=("parallel",),
            vmem_limit_bytes=32 * 1024 * 1024),
    )(y, scale, shift)


# ---------------------------------------------------------------------------
# Decoder forward (CConvTranspose2d -> CBatchNorm2d -> LeakyReLU, or last layer)
# ---------------------------------------------------------------------------
def decoder_forward(x, wt_r, wt_i, b_r, b_i,
                    gamma_r, beta_r, gamma_i, beta_i, *,
                    stride, padding, output_padding,
                    eps=1e-5, negative_slope=0.01, last_layer=False,
                    target_rows=512, compute_dtype=jnp.bfloat16,
                    out_dtype=jnp.float32):
    """
    x       : (N, C_in, H, W, 2)  float32, last dim = (real, imag)
    wt_r/i  : (C_in, C_out, kh, kw)  PyTorch ConvTranspose2d weight layout
    b_r/i   : (C_out,)
    gamma_*, beta_* : (C_out,)  CBatchNorm2d affine params
    returns : (N, C_out, H_out, W_out, 2)
    """
    N, C_in, H, W, _ = x.shape
    _, C_out, kh, kw = wt_r.shape
    sh, sw = stride
    ph, pw = padding
    oph, opw = output_padding

    Ho = (H - 1) * sh - 2 * ph + kh + oph
    Wo = (W - 1) * sw - 2 * pw + kw + opw
    M = N * Ho * Wo
    K = C_in * kh * kw
    K2, C2 = 2 * K, 2 * C_out
    K2p, C2p = _round_up(K2, 128), _round_up(C2, 128)
    tm, n_tiles = _choose_tiles(M, target_rows)
    Mp = tm * n_tiles

    # ---- prologue: merge real/imag into channels, then ONE fused XLA op that
    #      zero-dilates (stride), edge-pads and extracts all kh*kw patches, in
    #      bf16.  Feature order of the patches is (component, C_in, kh, kw),
    #      matching the fused-weight row order below.
    # TODO(synk): a sub-pixel (phase) decomposition of the transposed conv would
    # avoid the ~75% structural zeros in the dilated patch matrix entirely.
    x2 = jnp.concatenate([x[..., 0], x[..., 1]], axis=1).astype(compute_dtype)
    patches = lax.conv_general_dilated_patches(
        x2, filter_shape=(kh, kw), window_strides=(1, 1),
        padding=[(kh - 1 - ph, kh - 1 - ph + oph),
                 (kw - 1 - pw, kw - 1 - pw + opw)],
        lhs_dilation=(sh, sw),
        dimension_numbers=("NCHW", "OIHW", "NCHW"))        # (N, K2, Ho, Wo)
    patches = jnp.transpose(patches, (0, 2, 3, 1)).reshape(M, K2)
    patches = jnp.pad(patches, ((0, Mp - M), (0, K2p - K2)))

    # ---- forward-conv-equivalent weights (flip spatial, swap in/out channels),
    #      then build the fused complex weight / bias.
    def as_fwd_conv(wt):                      # (C_in, C_out, kh, kw) -> (K, C_out)
        w = jnp.transpose(jnp.flip(wt, axis=(-2, -1)), (1, 0, 2, 3))
        return w.reshape(C_out, K).T
    wr, wi = as_fwd_conv(wt_r), as_fwd_conv(wt_i)
    w_fused = jnp.concatenate(
        [jnp.concatenate([wr, wi], axis=1),
         jnp.concatenate([-wi, wr], axis=1)], axis=0)                # (2K, 2*C_out)
    w_fused = jnp.pad(w_fused, ((0, K2p - K2), (0, C2p - C2))).astype(compute_dtype)
    b_fused = jnp.concatenate([b_r - b_i, b_r + b_i])[None, :]       # (1, 2*C_out)
    b_fused = jnp.pad(b_fused, ((0, 0), (0, C2p - C2))).astype(jnp.float32)

    if last_layer:
        # Single Pallas kernel: matmul + bias + phase*tanh(|z|) epilogue, fused.
        out_packed = _fused_cmatmul(patches, w_fused, b_fused, tm=tm, m_valid=M,
                                    last_layer=True, out_dtype=out_dtype)
    else:
        # Pass 1: matmul + bias + masked per-tile partial stats.
        y, s_part, q_part = _fused_cmatmul(patches, w_fused, b_fused, tm=tm,
                                           m_valid=M, last_layer=False,
                                           out_dtype=jnp.float32)
        # Tiny XLA reduction over (n_tiles*8, C2) partials -> batch mean / var
        # (training-mode, biased variance, like torch BatchNorm2d normalization).
        s = jnp.sum(s_part[:, :C2], axis=0)
        q = jnp.sum(q_part[:, :C2], axis=0)
        mean = s / M
        var = jnp.maximum(q / M - mean * mean, 0.0)
        gamma = jnp.concatenate([gamma_r, gamma_i])
        beta = jnp.concatenate([beta_r, beta_i])
        scale = gamma * lax.rsqrt(var + eps)
        shift = beta - mean * scale
        scale = jnp.pad(scale, (0, C2p - C2))[None, :].astype(jnp.float32)
        shift = jnp.pad(shift, (0, C2p - C2))[None, :].astype(jnp.float32)
        # Pass 2: fused BN-affine + LeakyReLU (only remaining read of y).
        out_packed = _bn_lrelu_apply(y, scale, shift, tm=tm,
                                     negative_slope=negative_slope,
                                     out_dtype=out_dtype)
        # TODO(synk): BatchNorm running_mean/var (momentum) updates are not
        # produced; only the forward output is computed.

    # ---- unpack to the PyTorch output layout (N, C_out, H_out, W_out, 2)
    out = out_packed[:M, :C2].astype(jnp.float32)
    out_r = out[:, :C_out].reshape(N, Ho, Wo, C_out).transpose(0, 3, 1, 2)
    out_i = out[:, C_out:].reshape(N, Ho, Wo, C_out).transpose(0, 3, 1, 2)
    return jnp.stack([out_r, out_i], axis=-1)


# ---------------------------------------------------------------------------
# Pure-JAX (f32) reference for correctness checking
# ---------------------------------------------------------------------------
def decoder_ref(x, wt_r, wt_i, b_r, b_i, gamma_r, beta_r, gamma_i, beta_i, *,
                stride, padding, output_padding,
                eps=1e-5, negative_slope=0.01, last_layer=False):
    kh, kw = wt_r.shape[-2:]
    sh, sw = stride
    ph, pw = padding
    oph, opw = output_padding

    def convt(inp, wt, b):
        w = jnp.transpose(jnp.flip(wt, axis=(-2, -1)), (1, 0, 2, 3))   # OIHW
        y = lax.conv_general_dilated(
            inp, w, window_strides=(1, 1),
            padding=[(kh - 1 - ph, kh - 1 - ph + oph),
                     (kw - 1 - pw, kw - 1 - pw + opw)],
            lhs_dilation=(sh, sw),
            dimension_numbers=("NCHW", "OIHW", "NCHW"))
        return y + b[None, :, None, None]

    x_r, x_i = x[..., 0], x[..., 1]
    ct_r = convt(x_r, wt_r, b_r) - convt(x_i, wt_i, b_i)
    ct_i = convt(x_r, wt_i, b_i) + convt(x_i, wt_r, b_r)
    conved = jnp.stack([ct_r, ct_i], axis=-1)

    if last_layer:
        a = jnp.abs(conved)
        return conved / (a + 1e-8) * jnp.tanh(a)

    def bn(z, g, b):
        m = jnp.mean(z, axis=(0, 2, 3), keepdims=True)
        v = jnp.var(z, axis=(0, 2, 3), keepdims=True)
        return (z - m) / jnp.sqrt(v + eps) * g[None, :, None, None] + b[None, :, None, None]

    normed = jnp.stack([bn(ct_r, gamma_r, beta_r), bn(ct_i, gamma_i, beta_i)], axis=-1)
    return jnp.where(normed >= 0, normed, negative_slope * normed)


# ---------------------------------------------------------------------------
# Deterministic parameter init (xavier-uniform weights, uniform bias, BN = 1/0)
# ---------------------------------------------------------------------------
def init_decoder_params(key, in_channels, out_channels, kernel_size):
    kh, kw = kernel_size
    fan_in = out_channels * kh * kw      # PyTorch fan for ConvTranspose2d weight
    fan_out = in_channels * kh * kw
    bw = float(np.sqrt(6.0 / (fan_in + fan_out)))
    bb = float(1.0 / np.sqrt(fan_in))
    k1, k2, k3, k4 = jax.random.split(key, 4)
    wt_r = jax.random.uniform(k1, (in_channels, out_channels, kh, kw),
                              jnp.float32, -bw, bw)
    wt_i = jax.random.uniform(k2, (in_channels, out_channels, kh, kw),
                              jnp.float32, -bw, bw)
    b_r = jax.random.uniform(k3, (out_channels,), jnp.float32, -bb, bb)
    b_i = jax.random.uniform(k4, (out_channels,), jnp.float32, -bb, bb)
    return dict(wt_r=wt_r, wt_i=wt_i, b_r=b_r, b_i=b_i,
                gamma_r=jnp.ones((out_channels,), jnp.float32),
                beta_r=jnp.zeros((out_channels,), jnp.float32),
                gamma_i=jnp.ones((out_channels,), jnp.float32),
                beta_i=jnp.zeros((out_channels,), jnp.float32))


if __name__ == "__main__":
    key = jax.random.PRNGKey(0)
    kx, kp = jax.random.split(key)

    # Decoder defaults: kernel (7,5), stride (2,2), in=1, out=45, no padding.
    N, C_in, H, W = 2, 1, 8, 8
    C_out = 45
    filter_size, stride = (7, 5), (2, 2)
    padding, output_padding = (0, 0), (0, 0)

    x = jax.random.normal(kx, (N, C_in, H, W, 2), jnp.float32)
    params = init_decoder_params(kp, C_in, C_out, filter_size)

    # ---- default path: CConvTranspose2d -> CBatchNorm2d -> LeakyReLU
    fwd = jax.jit(functools.partial(
        decoder_forward, stride=stride, padding=padding,
        output_padding=output_padding, last_layer=False))
    out = jax.block_until_ready(fwd(x, **params))
    ref = decoder_ref(x, **params, stride=stride, padding=padding,
                      output_padding=output_padding, last_layer=False)
    np.testing.assert_allclose(np.asarray(out), np.asarray(ref),
                               rtol=3e-2, atol=3e-2)  # bf16 inputs, f32 accum

    # ---- last-layer path: phase * tanh(magnitude), fused into the matmul kernel
    fwd_last = jax.jit(functools.partial(
        decoder_forward, stride=stride, padding=padding,
        output_padding=output_padding, last_layer=True))
    out_l = jax.block_until_ready(fwd_last(x, **params))
    ref_l = decoder_ref(x, **params, stride=stride, padding=padding,
                        output_padding=output_padding, last_layer=True)
    np.testing.assert_allclose(np.asarray(out_l), np.asarray(ref_l),
                               rtol=3e-2, atol=3e-2)

    print("KERNEL_OK")
</pallas_src>

<mosaic_0001>
module attributes {stable_mosaic.version = 11 : i64} {
  func.func @_cconvt_stats_kernel(%arg0: i32, %arg1: memref<400x128xbf16, #tpu.memory_space<vmem>>, %arg2: memref<128x128xbf16, #tpu.memory_space<vmem>>, %arg3: memref<1x128xf32, #tpu.memory_space<vmem>>, %arg4: memref<400x128xf32, #tpu.memory_space<vmem>>, %arg5: memref<8x128xf32, #tpu.memory_space<vmem>>, %arg6: memref<8x128xf32, #tpu.memory_space<vmem>>) attributes {dimension_semantics = [#tpu.dimension_semantics<parallel>], iteration_bounds = array<i64: 2>, scalar_prefetch = 0 : i64, scratch_operands = 0 : i64, tpu.core_type = #tpu.core_type<tc>, window_params = [{transform_indices = @transform_0, window_bounds = array<i64: 400, 128>}, {pipeline_mode = #tpu.pipeline_mode<synchronous>, transform_indices = @transform_1, window_bounds = array<i64: 128, 128>}, {pipeline_mode = #tpu.pipeline_mode<synchronous>, transform_indices = @transform_2, window_bounds = array<i64: 1, 128>}, {transform_indices = @transform_3, window_bounds = array<i64: 400, 128>}, {transform_indices = @transform_4, window_bounds = array<i64: 8, 128>}, {transform_indices = @transform_5, window_bounds = array<i64: 8, 128>}]} {
    %c0 = arith.constant 0 : index
    %c0_0 = arith.constant 0 : index
    %0 = vector.load %arg1[%c0, %c0_0] : memref<400x128xbf16, #tpu.memory_space<vmem>>, vector<400x128xbf16>
    %c0_1 = arith.constant 0 : index
    %c0_2 = arith.constant 0 : index
    %1 = vector.load %arg2[%c0_1, %c0_2] : memref<128x128xbf16, #tpu.memory_space<vmem>>, vector<128x128xbf16>
    %cst = arith.constant dense<0.000000e+00> : vector<400x128xf32>
    %2 = tpu.matmul %0, %1, %cst {dimension_numbers = #tpu.dot_dimension_numbers<[1], [0], [0], [1], [0, 0, 1, 1], [], []>} : vector<400x128xbf16>, vector<128x128xbf16>, vector<400x128xf32> -> vector<400x128xf32>
    %c0_3 = arith.constant 0 : index
    %c0_4 = arith.constant 0 : index
    %3 = vector.load %arg3[%c0_3, %c0_4] : memref<1x128xf32, #tpu.memory_space<vmem>>, vector<1x128xf32>
    %4 = vector.broadcast %3 : vector<1x128xf32> to vector<400x128xf32>
    %5 = arith.addf %2, %4 : vector<400x128xf32>
    %c0_5 = arith.constant 0 : index
    %c0_6 = arith.constant 0 : index
    %6 = vector.load %arg4[%c0_5, %c0_6] : memref<400x128xf32, #tpu.memory_space<vmem>>, vector<400x128xf32>
    tpu.vector_store %arg4[%c0_5, %c0_6], %5 {strides = array<i32>} : memref<400x128xf32, #tpu.memory_space<vmem>>, vector<400x128xf32>,
    %c400_i32 = arith.constant 400 : i32
    %7 = arith.muli %arg0, %c400_i32 : i32
    %8 = tpu.iota {dimensions = array<i32: 0>} : vector<400x1xi32>
    %9 = vector.broadcast %7 : i32 to vector<400x1xi32>
    %10 = arith.addi %9, %8 : vector<400x1xi32>
    %c798_i32 = arith.constant 798 : i32
    %11 = vector.broadcast %c798_i32 : i32 to vector<400x1xi32>
    %12 = arith.cmpi slt, %10, %11 : vector<400x1xi32>
    %cst_7 = arith.constant 0.000000e+00 : f32
    %13 = vector.shape_cast %12 : vector<400x1xi1> to vector<400x1xi1>
    %14 = vector.broadcast %13 : vector<400x1xi1> to vector<400x128xi1>
    %15 = vector.broadcast %cst_7 : f32 to vector<400x128xf32>
    %16 = arith.select %14, %5, %15 : vector<400x128xi1>, vector<400x128xf32>
    %cst_8 = arith.constant dense<0.000000e+00> : vector<128xf32>
    %17 = vector.multi_reduction <add>, %16, %cst_8 [0] : vector<400x128xf32> to vector<128xf32>
    %18 = vector.shape_cast %17 : vector<128xf32> to vector<1x128xf32>
    %19 = arith.mulf %16, %16 : vector<400x128xf32>
    %cst_9 = arith.constant dense<0.000000e+00> : vector<128xf32>
    %20 = vector.multi_reduction <add>, %19, %cst_9 [0] : vector<400x128xf32> to vector<128xf32>
    %21 = vector.shape_cast %20 : vector<128xf32> to vector<1x128xf32>
    %22 = tpu.iota {dimensions = array<i32: 0>} : vector<8x1xi32>
    %c0_i32 = arith.constant 0 : i32
    %23 = vector.broadcast %c0_i32 : i32 to vector<8x1xi32>
    %24 = arith.cmpi eq, %22, %23 : vector<8x1xi32>
    %cst_10 = arith.constant 0.000000e+00 : f32
    %25 = vector.shape_cast %24 : vector<8x1xi1> to vector<8x1xi1>
    %26 = vector.broadcast %25 : vector<8x1xi1> to vector<8x128xi1>
    %27 = vector.shape_cast %18 : vector<1x128xf32> to vector<1x128xf32>
    %28 = vector.broadcast %27 : vector<1x128xf32> to vector<8x128xf32>
    %29 = vector.broadcast %cst_10 : f32 to vector<8x128xf32>
    %30 = arith.select %26, %28, %29 : vector<8x128xi1>, vector<8x128xf32>
    %c0_11 = arith.constant 0 : index
    %c0_12 = arith.constant 0 : index
    %31 = vector.load %arg5[%c0_11, %c0_12] : memref<8x128xf32, #tpu.memory_space<vmem>>, vector<8x128xf32>
    tpu.vector_store %arg5[%c0_11, %c0_12], %30 {strides = array<i32>} : memref<8x128xf32, #tpu.memory_space<vmem>>, vector<8x128xf32>,
    %cst_13 = arith.constant 0.000000e+00 : f32
    %32 = vector.shape_cast %24 : vector<8x1xi1> to vector<8x1xi1>
    %33 = vector.broadcast %32 : vector<8x1xi1> to vector<8x128xi1>
    %34 = vector.shape_cast %21 : vector<1x128xf32> to vector<1x128xf32>
    %35 = vector.broadcast %34 : vector<1x128xf32> to vector<8x128xf32>
    %36 = vector.broadcast %cst_13 : f32 to vector<8x128xf32>
    %37 = arith.select %33, %35, %36 : vector<8x128xi1>, vector<8x128xf32>
    %c0_14 = arith.constant 0 : index
    %c0_15 = arith.constant 0 : index
    %38 = vector.load %arg6[%c0_14, %c0_15] : memref<8x128xf32, #tpu.memory_space<vmem>>, vector<8x128xf32>
    tpu.vector_store %arg6[%c0_14, %c0_15], %37 {strides = array<i32>} : memref<8x128xf32, #tpu.memory_space<vmem>>, vector<8x128xf32>,
    return
  }
  func.func @transform_0(%arg0: i32) -> (i32, i32) {
    %c0_i32 = arith.constant 0 : i32
    %c0_i32_0 = arith.constant 0 : i32
    return %arg0, %c0_i32 : i32, i32
  }
  func.func @transform_1(%arg0: i32) -> (i32, i32) {
    %c0_i32 = arith.constant 0 : i32
    %c0_i32_0 = arith.constant 0 : i32
    %c0_i32_1 = arith.constant 0 : i32
    return %c0_i32, %c0_i32_0 : i32, i32
  }
  func.func @transform_2(%arg0: i32) -> (i32, i32) {
    %c0_i32 = arith.constant 0 : i32
    %c0_i32_0 = arith.constant 0 : i32
    %c0_i32_1 = arith.constant 0 : i32
    return %c0_i32, %c0_i32_0 : i32, i32
  }
  func.func @transform_3(%arg0: i32) -> (i32, i32) {
    %c0_i32 = arith.constant 0 : i32
    %c0_i32_0 = arith.constant 0 : i32
    return %arg0, %c0_i32 : i32, i32
  }
  func.func @transform_4(%arg0: i32) -> (i32, i32) {
    %c0_i32 = arith.constant 0 : i32
    %c0_i32_0 = arith.constant 0 : i32
    return %arg0, %c0_i32 : i32, i32
  }
  func.func @transform_5(%arg0: i32) -> (i32, i32) {
    %c0_i32 = arith.constant 0 : i32
    %c0_i32_0 = arith.constant 0 : i32
    return %arg0, %c0_i32 : i32, i32
  }
}

module attributes {stable_mosaic.version = 11 : i64} {
  func.func @_bn_lrelu_kernel(%arg0: i32, %arg1: memref<400x128xf32, #tpu.memory_space<vmem>>, %arg2: memref<1x128xf32, #tpu.memory_space<vmem>>, %arg3: memref<1x128xf32, #tpu.memory_space<vmem>>, %arg4: memref<400x128xf32, #tpu.memory_space<vmem>>) attributes {dimension_semantics = [#tpu.dimension_semantics<parallel>], iteration_bounds = array<i64: 2>, scalar_prefetch = 0 : i64, scratch_operands = 0 : i64, tpu.core_type = #tpu.core_type<tc>, window_params = [{transform_indices = @transform_0, window_bounds = array<i64: 400, 128>}, {pipeline_mode = #tpu.pipeline_mode<synchronous>, transform_indices = @transform_1, window_bounds = array<i64: 1, 128>}, {pipeline_mode = #tpu.pipeline_mode<synchronous>, transform_indices = @transform_2, window_bounds = array<i64: 1, 128>}, {transform_indices = @transform_3, window_bounds = array<i64: 400, 128>}]} {
    %c0 = arith.constant 0 : index
    %c0_0 = arith.constant 0 : index
    %0 = vector.load %arg1[%c0, %c0_0] : memref<400x128xf32, #tpu.memory_space<vmem>>, vector<400x128xf32>
    %c0_1 = arith.constant 0 : index
    %c0_2 = arith.constant 0 : index
    %1 = vector.load %arg2[%c0_1, %c0_2] : memref<1x128xf32, #tpu.memory_space<vmem>>, vector<1x128xf32>
    %2 = vector.broadcast %1 : vector<1x128xf32> to vector<400x128xf32>
    %3 = arith.mulf %0, %2 : vector<400x128xf32>
    %c0_3 = arith.constant 0 : index
    %c0_4 = arith.constant 0 : index
    %4 = vector.load %arg3[%c0_3, %c0_4] : memref<1x128xf32, #tpu.memory_space<vmem>>, vector<1x128xf32>
    %5 = vector.broadcast %4 : vector<1x128xf32> to vector<400x128xf32>
    %6 = arith.addf %3, %5 : vector<400x128xf32>
    %cst = arith.constant 0.000000e+00 : f32
    %7 = vector.broadcast %cst : f32 to vector<400x128xf32>
    %8 = arith.cmpf oge, %6, %7 : vector<400x128xf32>
    %cst_5 = arith.constant 0.00999999977 : f32
    %9 = vector.broadcast %cst_5 : f32 to vector<400x128xf32>
    %10 = arith.mulf %9, %6 : vector<400x128xf32>
    %11 = arith.select %8, %6, %10 : vector<400x128xi1>, vector<400x128xf32>
    %c0_6 = arith.constant 0 : index
    %c0_7 = arith.constant 0 : index
    %12 = vector.load %arg4[%c0_6, %c0_7] : memref<400x128xf32, #tpu.memory_space<vmem>>, vector<400x128xf32>
    tpu.vector_store %arg4[%c0_6, %c0_7], %11 {strides = array<i32>} : memref<400x128xf32, #tpu.memory_space<vmem>>, vector<400x128xf32>,
    return
  }
  func.func @transform_0(%arg0: i32) -> (i32, i32) {
    %c0_i32 = arith.constant 0 : i32
    %c0_i32_0 = arith.constant 0 : i32
    return %arg0, %c0_i32 : i32, i32
  }
  func.func @transform_1(%arg0: i32) -> (i32, i32) {
    %c0_i32 = arith.constant 0 : i32
    %c0_i32_0 = arith.constant 0 : i32
    %c0_i32_1 = arith.constant 0 : i32
    return %c0_i32, %c0_i32_0 : i32, i32
  }
  func.func @transform_2(%arg0: i32) -> (i32, i32) {
    %c0_i32 = arith.constant 0 : i32
    %c0_i32_0 = arith.constant 0 : i32
    %c0_i32_1 = arith.constant 0 : i32
    return %c0_i32, %c0_i32_0 : i32, i32
  }
  func.func @transform_3(%arg0: i32) -> (i32, i32) {
    %c0_i32 = arith.constant 0 : i32
    %c0_i32_0 = arith.constant 0 : i32
    return %arg0, %c0_i32 : i32, i32
  }
}

</mosaic_0001>

<bundles_post_ra>
// kernel: decoder_forward.3
= control target key start
LH: loop header
LB: loop body
LE: loop exit
PB: predicated region body
PF: predicated region fallthrough
CT: control target
= control target key end

     0   :  { %s641_s12 = smov 0   ;;  %s875_s0 = inlined_call_operand.vmem [shape: f32[800,128], index: 0, kind: input, shape index: {}]   ;;  %s876_s1 = inlined_call_operand.vmem [shape: f32[1,128], index: 1, kind: input, shape index: {}]   ;;  %s877_s2 = inlined_call_operand.vmem [shape: f32[1,128], index: 2, kind: input, shape index: {}]   ;;  %s878_s3 = inlined_call_operand.vmem [shape: f32[800,128], index: 3, kind: output, shape index: {}]  }
   0x1 LB: > { %s594_s13 = sadd.s32 4294967295, %s619_s12   ;;  %p598_p0 = scmp.ge.s32.totalorder %s619_s12, 1  ;;  %s619_s12 = sphi %s641_s12, %s13_s12  }
   0x2   : > { %p138_p1 = scmp.lt.s32.totalorder %s619_s12, 3 }
   0x4   : > { %p139_p2 = pnand %p598_p0, %p138_p1 }
   0x5   : > { %s162_s14 = smul.u32 (!%p139_p2), 50, %s594_s13  ;;  %v655_v0 = vld [vmem:[%s876_s1] ss:$0 sm:$0xff] (!%p139_p2) }
   0x6   : > { %142 = sbr.rel (%p139_p2) target bundleno = 85 (0x55), region = 32  ;;  %v665_v1 = vld [vmem:[%s877_s2] ss:$0 sm:$0xff] (!%p139_p2) }
   0x7   : > { %p163_p3 = scmp.lt.s32.totalorder (!%p139_p2), %s162_s14, 99 }
   0xd   : > { %s880_s14 = smov (!%p163_p3, %s162_s14), 99 }
   0xe   : > { %s599_s15 = sshll.u32 %s880_s14, 3 }
   0xf   : > { %s660_s20 = scalar_lea.vmem %s875_s0, %s599_s15  ;;  %s693_s25 = scalar_lea.vmem %s878_s3, %s599_s15 }
  0x10   : > { %v174_v2 = vld [vmem:[%s660_s20] sm:$0xff]  ;;  %v175_v3 = vld [vmem:[%s660_s20 + $0x8] sm:$0xff]  ;;  %v176_v4 = vld [vmem:[%s660_s20 + $0x10] sm:$0xff] }
  0x11   : > { %v231_v5 = vmul.f32 %v655_v0, %v174_v2  ;;  %v232_v6 = vmul.f32 %v655_v0, %v175_v3  ;;  %v233_v7 = vmul.f32 %v655_v0, %v176_v4  ;;  %v177_v8 = vld [vmem:[%s660_s20 + $0x18] sm:$0xff]  ;;  %v178_v9 = vld [vmem:[%s660_s20 + $0x20] sm:$0xff]  ;;  %v179_v10 = vld [vmem:[%s660_s20 + $0x28] sm:$0xff] }
  0x12   : > { %v234_v11 = vmul.f32 %v655_v0, %v177_v8  ;;  %v235_v12 = vmul.f32 %v655_v0, %v178_v9  ;;  %v236_v13 = vmul.f32 %v655_v0, %v179_v10  ;;  %v180_v14 = vld [vmem:[%s660_s20 + $0x30] sm:$0xff]  ;;  %v181_v15 = vld [vmem:[%s660_s20 + $0x38] sm:$0xff]  ;;  %v182_v24 = vld [vmem:[%s660_s20 + $0x40] sm:$0xff] }
  0x13   : > { %v288_v16 = vadd.f32 %v665_v1, %v231_v5  ;;  %v289_v17 = vadd.f32 %v665_v1, %v232_v6  ;;  %v290_v18 = vadd.f32 %v665_v1, %v233_v7  ;;  %v237_v19 = vmul.f32 %v655_v0, %v180_v14  ;;  %v183_v32 = vld [vmem:[%s660_s20 + $0x48] sm:$0xff]  ;;  %v184_v33 = vld [vmem:[%s660_s20 + $0x50] sm:$0xff]  ;;  %v185_v34 = vld [vmem:[%s660_s20 + $0x58] sm:$0xff] }
  0x14   : > { %v291_v20 = vadd.f32 %v665_v1, %v234_v11  ;;  %v292_v21 = vadd.f32 %v665_v1, %v235_v12  ;;  %v293_v22 = vadd.f32 %v665_v1, %v236_v13  ;;  %v238_v23 = vmul.f32 %v655_v0, %v181_v15  ;;  %v186_v46 = vld [vmem:[%s660_s20 + $0x60] sm:$0xff]  ;;  %v187_v47 = vld [vmem:[%s660_s20 + $0x68] sm:$0xff]  ;;  %v188_v58 = vld [vmem:[%s660_s20 + $0x70] sm:$0xff] }
  0x15   : > { %vm338_vm0 = vcmp.ge.f32.partialorder %v288_v16, 0.0  ;;  %v388_v25 = vmul.f32 0.01, %v288_v16  ;;  %vm339_vm1 = vcmp.ge.f32.partialorder %v289_v17, 0.0  ;;  %v389_v26 = vmul.f32 0.01, %v289_v17 }
  0x16   : > { %vm340_vm2 = vcmp.ge.f32.partialorder %v290_v18, 0.0  ;;  %v390_v27 = vmul.f32 0.01, %v290_v18  ;;  %vm341_vm3 = vcmp.ge.f32.partialorder %v291_v20, 0.0  ;;  %v391_v28 = vmul.f32 0.01, %v291_v20 }
  0x17   : > { %v438_v29 = vsel %vm338_vm0, %v288_v16, %v388_v25  ;;  %v439_v30 = vsel %vm339_vm1, %v289_v17, %v389_v26  ;;  %vm342_vm4 = vcmp.ge.f32.partialorder %v292_v21, 0.0  ;;  %v392_v31 = vmul.f32 0.01, %v292_v21  ;;  %v189_v59 = vld [vmem:[%s660_s20 + $0x78] sm:$0xff]  ;;  %v190_v6 = vld [vmem:[%s660_s20 + $0x80] sm:$0xff]  ;;  %v191_v7 = vld [vmem:[%s660_s20 + $0x88] sm:$0xff] }
  0x18   : > { %488 = vst [vmem:[%s693_s25] sm:$0xff] %v438_v29  ;;  %489 = vst [vmem:[%s693_s25 + $0x8] sm:$0xff] %v439_v30  ;;  %v440_v35 = vsel %vm340_vm2, %v290_v18, %v390_v27  ;;  %v441_v36 = vsel %vm341_vm3, %v291_v20, %v391_v28  ;;  %vm343_vm5 = vcmp.ge.f32.partialorder %v293_v22, 0.0  ;;  %v393_v37 = vmul.f32 0.01, %v293_v22  ;;  %v192_v12 = vld [vmem:[%s660_s20 + $0x90] sm:$0xff]  ;;  %v193_v13 = vld [vmem:[%s660_s20 + $0x98] sm:$0xff] }
  0x19   : > { %490 = vst [vmem:[%s693_s25 + $0x10] sm:$0xff] %v440_v35  ;;  %491 = vst [vmem:[%s693_s25 + $0x18] sm:$0xff] %v441_v36  ;;  %v442_v38 = vsel %vm342_vm4, %v292_v21, %v392_v31  ;;  %v294_v39 = vadd.f32 %v665_v1, %v237_v19  ;;  %v295_v40 = vadd.f32 %v665_v1, %v238_v23  ;;  %v195_v25 = vld [vmem:[%s660_s20 + $0xa8] sm:$0xff]  ;;  %v196_v36 = vld [vmem:[%s660_s20 + $0xb0] sm:$0xff] }
  0x1a   : > { %v239_v41 = vmul.f32 %v655_v0, %v182_v24  ;;  %492 = vst [vmem:[%s693_s25 + $0x20] sm:$0xff] %v442_v38  ;;  %v443_v42 = vsel %vm343_vm5, %v293_v22, %v393_v37  ;;  %v240_v43 = vmul.f32 %v655_v0, %v183_v32  ;;  %v241_v44 = vmul.f32 %v655_v0, %v184_v33  ;;  %v194_v24 = vld [vmem:[%s660_s20 + $0xa0] sm:$0xff]  ;;  %v197_v37 = vld [vmem:[%s660_s20 + $0xb8] sm:$0xff] }
  0x1b   : > { %v242_v45 = vmul.f32 %v655_v0, %v185_v34  ;;  %493 = vst [vmem:[%s693_s25 + $0x28] sm:$0xff] %v443_v42  ;;  %vm344_vm6 = vcmp.ge.f32.partialorder %v294_v39, 0.0  ;;  %v394_v48 = vmul.f32 0.01, %v294_v39  ;;  %vm345_vm7 = vcmp.ge.f32.partialorder %v295_v40, 0.0 }
  0x1c   : > { %v395_v49 = vmul.f32 0.01, %v295_v40  ;;  %v296_v50 = vadd.f32 %v665_v1, %v239_v41  ;;  %v297_v51 = vadd.f32 %v665_v1, %v240_v43  ;;  %v298_v52 = vadd.f32 %v665_v1, %v241_v44 }
  0x1d   : > { %v299_v53 = vadd.f32 %v665_v1, %v242_v45  ;;  %v444_v54 = vsel %vm344_vm6, %v294_v39, %v394_v48  ;;  %v243_v56 = vmul.f32 %v655_v0, %v186_v46  ;;  %v244_v57 = vmul.f32 %v655_v0, %v187_v47  ;;  %v198_v46 = vld [vmem:[%s660_s20 + $0xc0] sm:$0xff]  ;;  %v199_v47 = vld [vmem:[%s660_s20 + $0xc8] sm:$0xff] }
  0x1e   : > { %v445_v55 = vsel %vm345_vm7, %v295_v40, %v395_v49  ;;  %494 = vst [vmem:[%s693_s25 + $0x30] sm:$0xff] %v444_v54  ;;  %vm346_vm8 = vcmp.ge.f32.partialorder %v296_v50, 0.0  ;;  %v396_v60 = vmul.f32 0.01, %v296_v50  ;;  %vm347_vm9 = vcmp.ge.f32.partialorder %v297_v51, 0.0 }
  0x1f   : > { %495 = vst [vmem:[%s693_s25 + $0x38] sm:$0xff] %v445_v55  ;;  %v397_v61 = vmul.f32 0.01, %v297_v51  ;;  %vm348_vm10 = vcmp.ge.f32.partialorder %v298_v52, 0.0  ;;  %v398_v62 = vmul.f32 0.01, %v298_v52  ;;  %v300_v4 = vadd.f32 %v665_v1, %v243_v56 }
  0x20   : > { %vm349_vm11 = vcmp.ge.f32.partialorder %v299_v53, 0.0  ;;  %v399_v63 = vmul.f32 0.01, %v299_v53  ;;  %v446_v2 = vsel %vm346_vm8, %v296_v50, %v396_v60  ;;  %v301_v5 = vadd.f32 %v665_v1, %v244_v57 }
  0x21   : > { %v447_v3 = vsel %vm347_vm9, %v297_v51, %v397_v61  ;;  %496 = vst [vmem:[%s693_s25 + $0x40] sm:$0xff] %v446_v2  ;;  %v448_v8 = vsel %vm348_vm10, %v298_v52, %v398_v62  ;;  %v245_v10 = vmul.f32 %v655_v0, %v188_v58  ;;  %v246_v11 = vmul.f32 %v655_v0, %v189_v59  ;;  %v200_v52 = vld [vmem:[%s660_s20 + $0xd0] sm:$0xff]  ;;  %v202_v2 = vld [vmem:[%s660_s20 + $0xe0] sm:$0xff] }
  0x22   : > { %497 = vst [vmem:[%s693_s25 + $0x48] sm:$0xff] %v447_v3  ;;  %v449_v9 = vsel %vm349_vm11, %v299_v53, %v399_v63  ;;  %498 = vst [vmem:[%s693_s25 + $0x50] sm:$0xff] %v448_v8  ;;  %vm350_vm12 = vcmp.ge.f32.partialorder %v300_v4, 0.0  ;;  %v400_v14 = vmul.f32 0.01, %v300_v4  ;;  %vm351_vm13 = vcmp.ge.f32.partialorder %v301_v5, 0.0 }
  0x23   : > { %499 = vst [vmem:[%s693_s25 + $0x58] sm:$0xff] %v449_v9  ;;  %v401_v15 = vmul.f32 0.01, %v301_v5  ;;  %v302_v16 = vadd.f32 %v665_v1, %v245_v10  ;;  %v303_v17 = vadd.f32 %v665_v1, %v246_v11  ;;  %v247_v18 = vmul.f32 %v655_v0, %v190_v6  ;;  %v201_v53 = vld [vmem:[%s660_s20 + $0xd8] sm:$0xff]  ;;  %v203_v3 = vld [vmem:[%s660_s20 + $0xe8] sm:$0xff] }
  0x24   : > { %v248_v19 = vmul.f32 %v655_v0, %v191_v7  ;;  %v450_v20 = vsel %vm350_vm12, %v300_v4, %v400_v14  ;;  %v249_v22 = vmul.f32 %v655_v0, %v192_v12  ;;  %v250_v23 = vmul.f32 %v655_v0, %v193_v13  ;;  %v204_v14 = vld [vmem:[%s660_s20 + $0xf0] sm:$0xff] }
  0x25   : > { %v451_v21 = vsel %vm351_vm13, %v301_v5, %v401_v15  ;;  %500 = vst [vmem:[%s693_s25 + $0x60] sm:$0xff] %v450_v20  ;;  %vm352_vm14 = vcmp.ge.f32.partialorder %v302_v16, 0.0  ;;  %v402_v26 = vmul.f32 0.01, %v302_v16  ;;  %vm353_vm15 = vcmp.ge.f32.partialorder %v303_v17, 0.0  ;;  %v205_v15 = vld [vmem:[%s660_s20 + $0xf8] sm:$0xff] }
  0x26   : > { %501 = vst [vmem:[%s693_s25 + $0x68] sm:$0xff] %v451_v21  ;;  %v403_v27 = vmul.f32 0.01, %v303_v17  ;;  %v304_v28 = vadd.f32 %v665_v1, %v247_v18  ;;  %v305_v29 = vadd.f32 %v665_v1, %v248_v19  ;;  %v306_v30 = vadd.f32 %v665_v1, %v249_v22 }
  0x27   : > { %v307_v31 = vadd.f32 %v665_v1, %v250_v23  ;;  %v452_v32 = vsel %vm352_vm14, %v302_v16, %v402_v26  ;;  %v251_v34 = vmul.f32 %v655_v0, %v194_v24  ;;  %v252_v35 = vmul.f32 %v655_v0, %v195_v25  ;;  %v206_v24 = vld [vmem:[%s660_s20 + $0x100] sm:$0xff]  ;;  %v207_v25 = vld [vmem:[%s660_s20 + $0x108] sm:$0xff] }
  0x28   : > { %v453_v33 = vsel %vm353_vm15, %v303_v17, %v403_v27  ;;  %502 = vst [vmem:[%s693_s25 + $0x70] sm:$0xff] %v452_v32  ;;  %vm354_vm0 = vcmp.ge.f32.partialorder %v304_v28, 0.0  ;;  %v404_v38 = vmul.f32 0.01, %v304_v28  ;;  %vm355_vm1 = vcmp.ge.f32.partialorder %v305_v29, 0.0 }
  0x29   : > { %503 = vst [vmem:[%s693_s25 + $0x78] sm:$0xff] %v453_v33  ;;  %v405_v39 = vmul.f32 0.01, %v305_v29  ;;  %vm356_vm2 = vcmp.ge.f32.partialorder %v306_v30, 0.0  ;;  %v406_v40 = vmul.f32 0.01, %v306_v30  ;;  %v308_v44 = vadd.f32 %v665_v1, %v251_v34 }
  0x2a   : > { %vm357_vm3 = vcmp.ge.f32.partialorder %v307_v31, 0.0  ;;  %v407_v41 = vmul.f32 0.01, %v307_v31  ;;  %v454_v42 = vsel %vm354_vm0, %v304_v28, %v404_v38  ;;  %v309_v45 = vadd.f32 %v665_v1, %v252_v35 }
  0x2b   : > { %v455_v43 = vsel %vm355_vm1, %v305_v29, %v405_v39  ;;  %504 = vst [vmem:[%s693_s25 + $0x80] sm:$0xff] %v454_v42  ;;  %v456_v48 = vsel %vm356_vm2, %v306_v30, %v406_v40  ;;  %v253_v50 = vmul.f32 %v655_v0, %v196_v36  ;;  %v254_v51 = vmul.f32 %v655_v0, %v197_v37  ;;  %v208_v30 = vld [vmem:[%s660_s20 + $0x110] sm:$0xff]  ;;  %v210_v42 = vld [vmem:[%s660_s20 + $0x120] sm:$0xff] }
  0x2c   : > { %505 = vst [vmem:[%s693_s25 + $0x88] sm:$0xff] %v455_v43  ;;  %v457_v49 = vsel %vm357_vm3, %v307_v31, %v407_v41  ;;  %506 = vst [vmem:[%s693_s25 + $0x90] sm:$0xff] %v456_v48  ;;  %vm358_vm4 = vcmp.ge.f32.partialorder %v308_v44, 0.0  ;;  %v408_v54 = vmul.f32 0.01, %v308_v44  ;;  %vm359_vm5 = vcmp.ge.f32.partialorder %v309_v45, 0.0 }
  0x2d   : > { %507 = vst [vmem:[%s693_s25 + $0x98] sm:$0xff] %v457_v49  ;;  %v409_v55 = vmul.f32 0.01, %v309_v45  ;;  %v310_v56 = vadd.f32 %v665_v1, %v253_v50  ;;  %v311_v57 = vadd.f32 %v665_v1, %v254_v51  ;;  %v255_v58 = vmul.f32 %v655_v0, %v198_v46  ;;  %v209_v31 = vld [vmem:[%s660_s20 + $0x118] sm:$0xff]  ;;  %v211_v43 = vld [vmem:[%s660_s20 + $0x128] sm:$0xff] }
  0x2e   : > { %v256_v59 = vmul.f32 %v655_v0, %v199_v47  ;;  %v458_v60 = vsel %vm358_vm4, %v308_v44, %v408_v54  ;;  %v257_v62 = vmul.f32 %v655_v0, %v200_v52  ;;  %v258_v63 = vmul.f32 %v655_v0, %v201_v53  ;;  %v212_v54 = vld [vmem:[%s660_s20 + $0x130] sm:$0xff] }
  0x2f   : > { %v459_v61 = vsel %vm359_vm5, %v309_v45, %v409_v55  ;;  %508 = vst [vmem:[%s693_s25 + $0xa0] sm:$0xff] %v458_v60  ;;  %vm360_vm6 = vcmp.ge.f32.partialorder %v310_v56, 0.0  ;;  %v410_v4 = vmul.f32 0.01, %v310_v56  ;;  %vm361_vm7 = vcmp.ge.f32.partialorder %v311_v57, 0.0  ;;  %v213_v55 = vld [vmem:[%s660_s20 + $0x138] sm:$0xff] }
  0x30   : > { %509 = vst [vmem:[%s693_s25 + $0xa8] sm:$0xff] %v459_v61  ;;  %v411_v5 = vmul.f32 0.01, %v311_v57  ;;  %v312_v6 = vadd.f32 %v665_v1, %v255_v58  ;;  %v313_v7 = vadd.f32 %v665_v1, %v256_v59  ;;  %v314_v8 = vadd.f32 %v665_v1, %v257_v62 }
  0x31   : > { %v315_v9 = vadd.f32 %v665_v1, %v258_v63  ;;  %v460_v10 = vsel %vm360_vm6, %v310_v56, %v410_v4  ;;  %v259_v12 = vmul.f32 %v655_v0, %v202_v2  ;;  %v260_v13 = vmul.f32 %v655_v0, %v203_v3  ;;  %v214_v2 = vld [vmem:[%s660_s20 + $0x140] sm:$0xff]  ;;  %v215_v3 = vld [vmem:[%s660_s20 + $0x148] sm:$0xff] }
  0x32   : > { %v461_v11 = vsel %vm361_vm7, %v311_v57, %v411_v5  ;;  %510 = vst [vmem:[%s693_s25 + $0xb0] sm:$0xff] %v460_v10  ;;  %vm362_vm8 = vcmp.ge.f32.partialorder %v312_v6, 0.0  ;;  %v412_v16 = vmul.f32 0.01, %v312_v6  ;;  %vm363_vm9 = vcmp.ge.f32.partialorder %v313_v7, 0.0 }
  0x33   : > { %511 = vst [vmem:[%s693_s25 + $0xb8] sm:$0xff] %v461_v11  ;;  %v413_v17 = vmul.f32 0.01, %v313_v7  ;;  %vm364_vm10 = vcmp.ge.f32.partialorder %v314_v8, 0.0  ;;  %v414_v18 = vmul.f32 0.01, %v314_v8  ;;  %v316_v22 = vadd.f32 %v665_v1, %v259_v12 }
  0x34   : > { %vm365_vm11 = vcmp.ge.f32.partialorder %v315_v9, 0.0  ;;  %v415_v19 = vmul.f32 0.01, %v315_v9  ;;  %v462_v20 = vsel %vm362_vm8, %v312_v6, %v412_v16  ;;  %v317_v23 = vadd.f32 %v665_v1, %v260_v13 }
  0x35   : > { %v463_v21 = vsel %vm363_vm9, %v313_v7, %v413_v17  ;;  %512 = vst [vmem:[%s693_s25 + $0xc0] sm:$0xff] %v462_v20  ;;  %v464_v26 = vsel %vm364_vm10, %v314_v8, %v414_v18  ;;  %v261_v28 = vmul.f32 %v655_v0, %v204_v14  ;;  %v262_v29 = vmul.f32 %v655_v0, %v205_v15  ;;  %v216_v8 = vld [vmem:[%s660_s20 + $0x150] sm:$0xff]  ;;  %v218_v20 = vld [vmem:[%s660_s20 + $0x160] sm:$0xff] }
  0x36   : > { %513 = vst [vmem:[%s693_s25 + $0xc8] sm:$0xff] %v463_v21  ;;  %v465_v27 = vsel %vm365_vm11, %v315_v9, %v415_v19  ;;  %514 = vst [vmem:[%s693_s25 + $0xd0] sm:$0xff] %v464_v26  ;;  %vm366_vm12 = vcmp.ge.f32.partialorder %v316_v22, 0.0  ;;  %v416_v32 = vmul.f32 0.01, %v316_v22  ;;  %vm367_vm13 = vcmp.ge.f32.partialorder %v317_v23, 0.0 }
  0x37   : > { %515 = vst [vmem:[%s693_s25 + $0xd8] sm:$0xff] %v465_v27  ;;  %v417_v33 = vmul.f32 0.01, %v317_v23  ;;  %v318_v34 = vadd.f32 %v665_v1, %v261_v28  ;;  %v319_v35 = vadd.f32 %v665_v1, %v262_v29  ;;  %v263_v36 = vmul.f32 %v655_v0, %v206_v24  ;;  %v217_v9 = vld [vmem:[%s660_s20 + $0x158] sm:$0xff]  ;;  %v219_v21 = vld [vmem:[%s660_s20 + $0x168] sm:$0xff] }
  0x38   : > { %v264_v37 = vmul.f32 %v655_v0, %v207_v25  ;;  %v466_v38 = vsel %vm366_vm12, %v316_v22, %v416_v32  ;;  %v265_v40 = vmul.f32 %v655_v0, %v208_v30  ;;  %v266_v41 = vmul.f32 %v655_v0, %v209_v31  ;;  %v220_v32 = vld [vmem:[%s660_s20 + $0x170] sm:$0xff] }
  0x39   : > { %v467_v39 = vsel %vm367_vm13, %v317_v23, %v417_v33  ;;  %516 = vst [vmem:[%s693_s25 + $0xe0] sm:$0xff] %v466_v38  ;;  %vm368_vm14 = vcmp.ge.f32.partialorder %v318_v34, 0.0  ;;  %v418_v44 = vmul.f32 0.01, %v318_v34  ;;  %vm369_vm15 = vcmp.ge.f32.partialorder %v319_v35, 0.0  ;;  %v221_v33 = vld [vmem:[%s660_s20 + $0x178] sm:$0xff] }
  0x3a   : > { %517 = vst [vmem:[%s693_s25 + $0xe8] sm:$0xff] %v467_v39  ;;  %v419_v45 = vmul.f32 0.01, %v319_v35  ;;  %v320_v46 = vadd.f32 %v665_v1, %v263_v36  ;;  %v321_v47 = vadd.f32 %v665_v1, %v264_v37  ;;  %v322_v48 = vadd.f32 %v665_v1, %v265_v40 }
  0x3b   : > { %v323_v49 = vadd.f32 %v665_v1, %v266_v41  ;;  %v468_v50 = vsel %vm368_vm14, %v318_v34, %v418_v44  ;;  %v267_v52 = vmul.f32 %v655_v0, %v210_v42  ;;  %v268_v53 = vmul.f32 %v655_v0, %v211_v43  ;;  %v222_v42 = vld [vmem:[%s660_s20 + $0x180] sm:$0xff]  ;;  %v223_v43 = vld [vmem:[%s660_s20 + $0x188] sm:$0xff] }
  0x3c   : > { %v469_v51 = vsel %vm369_vm15, %v319_v35, %v419_v45  ;;  %518 = vst [vmem:[%s693_s25 + $0xf0] sm:$0xff] %v468_v50  ;;  %vm370_vm0 = vcmp.ge.f32.partialorder %v320_v46, 0.0  ;;  %v420_v56 = vmul.f32 0.01, %v320_v46  ;;  %vm371_vm1 = vcmp.ge.f32.partialorder %v321_v47, 0.0 }
  0x3d   : > { %519 = vst [vmem:[%s693_s25 + $0xf8] sm:$0xff] %v469_v51  ;;  %v421_v57 = vmul.f32 0.01, %v321_v47  ;;  %vm372_vm2 = vcmp.ge.f32.partialorder %v322_v48, 0.0  ;;  %v422_v58 = vmul.f32 0.01, %v322_v48  ;;  %v324_v62 = vadd.f32 %v665_v1, %v267_v52 }
  0x3e   : > { %vm373_vm3 = vcmp.ge.f32.partialorder %v323_v49, 0.0  ;;  %v423_v59 = vmul.f32 0.01, %v323_v49  ;;  %v470_v60 = vsel %vm370_vm0, %v320_v46, %v420_v56  ;;  %v325_v63 = vadd.f32 %v665_v1, %v268_v53 }
  0x3f   : > { %v471_v61 = vsel %vm371_vm1, %v321_v47, %v421_v57  ;;  %520 = vst [vmem:[%s693_s25 + $0x100] sm:$0xff] %v470_v60  ;;  %v472_v4 = vsel %vm372_vm2, %v322_v48, %v422_v58  ;;  %v269_v6 = vmul.f32 %v655_v0, %v212_v54  ;;  %v270_v7 = vmul.f32 %v655_v0, %v213_v55 }
  0x40   : > { %521 = vst [vmem:[%s693_s25 + $0x108] sm:$0xff] %v471_v61  ;;  %v473_v5 = vsel %vm373_vm3, %v323_v49, %v423_v59  ;;  %522 = vst [vmem:[%s693_s25 + $0x110] sm:$0xff] %v472_v4  ;;  %vm374_vm4 = vcmp.ge.f32.partialorder %v324_v62, 0.0  ;;  %v424_v10 = vmul.f32 0.01, %v324_v62  ;;  %vm375_vm5 = vcmp.ge.f32.partialorder %v325_v63, 0.0 }
  0x41   : > { %523 = vst [vmem:[%s693_s25 + $0x118] sm:$0xff] %v473_v5  ;;  %v425_v11 = vmul.f32 0.01, %v325_v63  ;;  %v326_v12 = vadd.f32 %v665_v1, %v269_v6  ;;  %v327_v13 = vadd.f32 %v665_v1, %v270_v7  ;;  %v271_v14 = vmul.f32 %v655_v0, %v214_v2 }
  0x42   : > { %v272_v15 = vmul.f32 %v655_v0, %v215_v3  ;;  %v474_v16 = vsel %vm374_vm4, %v324_v62, %v424_v10  ;;  %v273_v18 = vmul.f32 %v655_v0, %v216_v8  ;;  %v274_v19 = vmul.f32 %v655_v0, %v217_v9 }
  0x43   : > { %v475_v17 = vsel %vm375_vm5, %v325_v63, %v425_v11  ;;  %524 = vst [vmem:[%s693_s25 + $0x120] sm:$0xff] %v474_v16  ;;  %vm376_vm6 = vcmp.ge.f32.partialorder %v326_v12, 0.0  ;;  %v426_v22 = vmul.f32 0.01, %v326_v12  ;;  %vm377_vm7 = vcmp.ge.f32.partialorder %v327_v13, 0.0 }
  0x44   : > { %525 = vst [vmem:[%s693_s25 + $0x128] sm:$0xff] %v475_v17  ;;  %v427_v23 = vmul.f32 0.01, %v327_v13  ;;  %v328_v24 = vadd.f32 %v665_v1, %v271_v14  ;;  %v329_v25 = vadd.f32 %v665_v1, %v272_v15  ;;  %v330_v26 = vadd.f32 %v665_v1, %v273_v18 }
  0x45   : > { %v331_v27 = vadd.f32 %v665_v1, %v274_v19  ;;  %v476_v28 = vsel %vm376_vm6, %v326_v12, %v426_v22  ;;  %v275_v30 = vmul.f32 %v655_v0, %v218_v20  ;;  %v276_v31 = vmul.f32 %v655_v0, %v219_v21 }
  0x46   : > { %v477_v29 = vsel %vm377_vm7, %v327_v13, %v427_v23  ;;  %526 = vst [vmem:[%s693_s25 + $0x130] sm:$0xff] %v476_v28  ;;  %vm378_vm8 = vcmp.ge.f32.partialorder %v328_v24, 0.0  ;;  %v428_v34 = vmul.f32 0.01, %v328_v24  ;;  %vm379_vm9 = vcmp.ge.f32.partialorder %v329_v25, 0.0 }
  0x47   : > { %527 = vst [vmem:[%s693_s25 + $0x138] sm:$0xff] %v477_v29  ;;  %v429_v35 = vmul.f32 0.01, %v329_v25  ;;  %vm380_vm10 = vcmp.ge.f32.partialorder %v330_v26, 0.0  ;;  %v430_v36 = vmul.f32 0.01, %v330_v26  ;;  %v332_v40 = vadd.f32 %v665_v1, %v275_v30 }
  0x48   : > { %vm381_vm11 = vcmp.ge.f32.partialorder %v331_v27, 0.0  ;;  %v431_v37 = vmul.f32 0.01, %v331_v27  ;;  %v478_v38 = vsel %vm378_vm8, %v328_v24, %v428_v34  ;;  %v333_v41 = vadd.f32 %v665_v1, %v276_v31 }
  0x49   : > { %v479_v39 = vsel %vm379_vm9, %v329_v25, %v429_v35  ;;  %528 = vst [vmem:[%s693_s25 + $0x140] sm:$0xff] %v478_v38  ;;  %v480_v44 = vsel %vm380_vm10, %v330_v26, %v430_v36  ;;  %v277_v46 = vmul.f32 %v655_v0, %v220_v32  ;;  %v278_v47 = vmul.f32 %v655_v0, %v221_v33 }
  0x4a   : > { %529 = vst [vmem:[%s693_s25 + $0x148] sm:$0xff] %v479_v39  ;;  %v481_v45 = vsel %vm381_vm11, %v331_v27, %v431_v37  ;;  %530 = vst [vmem:[%s693_s25 + $0x150] sm:$0xff] %v480_v44  ;;  %vm382_vm12 = vcmp.ge.f32.partialorder %v332_v40, 0.0  ;;  %v432_v48 = vmul.f32 0.01, %v332_v40  ;;  %vm383_vm13 = vcmp.ge.f32.partialorder %v333_v41, 0.0 }
  0x4b   : > { %531 = vst [vmem:[%s693_s25 + $0x158] sm:$0xff] %v481_v45  ;;  %v433_v49 = vmul.f32 0.01, %v333_v41  ;;  %v334_v50 = vadd.f32 %v665_v1, %v277_v46  ;;  %v335_v51 = vadd.f32 %v665_v1, %v278_v47  ;;  %v279_v52 = vmul.f32 %v655_v0, %v222_v42 }
  0x4c   : > { %v280_v53 = vmul.f32 %v655_v0, %v223_v43  ;;  %v482_v54 = vsel %vm382_vm12, %v332_v40, %v432_v48 }
  0x4d   : > { %v483_v55 = vsel %vm383_vm13, %v333_v41, %v433_v49  ;;  %532 = vst [vmem:[%s693_s25 + $0x160] sm:$0xff] %v482_v54  ;;  %vm384_vm14 = vcmp.ge.f32.partialorder %v334_v50, 0.0  ;;  %v434_v56 = vmul.f32 0.01, %v334_v50  ;;  %vm385_vm15 = vcmp.ge.f32.partialorder %v335_v51, 0.0 }
  0x4e   : > { %533 = vst [vmem:[%s693_s25 + $0x168] sm:$0xff] %v483_v55  ;;  %v435_v57 = vmul.f32 0.01, %v335_v51  ;;  %v336_v58 = vadd.f32 %v665_v1, %v279_v52  ;;  %v337_v59 = vadd.f32 %v665_v1, %v280_v53 }
  0x4f   : > { %v484_v60 = vsel %vm384_vm14, %v334_v50, %v434_v56 }
  0x50   : > { %v485_v61 = vsel %vm385_vm15, %v335_v51, %v435_v57  ;;  %534 = vst [vmem:[%s693_s25 + $0x170] sm:$0xff] %v484_v60  ;;  %vm386_vm0 = vcmp.ge.f32.partialorder %v336_v58, 0.0  ;;  %v436_v0 = vmul.f32 0.01, %v336_v58  ;;  %vm387_vm1 = vcmp.ge.f32.partialorder %v337_v59, 0.0 }
  0x51   : > { %535 = vst [vmem:[%s693_s25 + $0x178] sm:$0xff] %v485_v61  ;;  %v437_v62 = vmul.f32 0.01, %v337_v59 }
  0x52   : > { %v486_v63 = vsel %vm386_vm0, %v336_v58, %v436_v0 }
  0x53   : > { %v487_v2 = vsel %vm387_vm1, %v337_v59, %v437_v62  ;;  %536 = vst [vmem:[%s693_s25 + $0x180] sm:$0xff] %v486_v63 }
  0x54   : > { %537 = vst [vmem:[%s693_s25 + $0x188] sm:$0xff] %v487_v2 }
  0x55 PF: > { %s13_s12 = sadd.s32 1, %s619_s12  }
  0x56   : > { %p10_p4 = scmp.ge.s32.totalorder %s13_s12, 4  }
  0x58   :  { %12 = sbr.rel (!%p10_p4) target bundleno = 1 (0x1), region = 62 }

// kernel: decoder_forward.2
= control target key start
LH: loop header
LB: loop body
LE: loop exit
PB: predicated region body
PF: predicated region fallthrough
CT: control target
= control target key end

     0   :  { %s1685_s18 = smov 0   ;;  %s2154_s0 = inlined_call_operand.vmem [shape: bf16[800,128], index: 0, kind: input, shape index: {}]   ;;  %s2155_s1 = inlined_call_operand.vmem [shape: bf16[128,128], index: 1, kind: input, shape index: {}]   ;;  %s2156_s2 = inlined_call_operand.vmem [shape: f32[1,128], index: 2, kind: input, shape index: {}]   ;;  %s2157_s3 = inlined_call_operand.vmem [shape: f32[800,128], index: 3, kind: output, shape index: {0}]   ;;  %s2158_s4 = inlined_call_operand.vmem [shape: f32[16,128], index: 4, kind: output, shape index: {1}]   ;;  %s2159_s5 = inlined_call_operand.vmem [shape: f32[16,128], index: 5, kind: output, shape index: {2}]  }
   0x1 LB: > { %s1691_s19 = sadd.s32 4294967295, %s1651_s18   ;;  %p1396_p0 = scmp.ge.s32.totalorder %s1651_s18, 1  ;;  %s1651_s18 = sphi %s1685_s18, %s16_s18  }
   0x2   : > { %p193_p1 = scmp.lt.s32.totalorder %s1651_s18, 3 }
   0x4   : > { %p194_p2 = pnand %p1396_p0, %p193_p1 }
   0x5   : > { %v1612_v0 = vld [vmem:[%s2155_s1] sm:$0xff] (!%p194_p2)   ;;  %v1653_v1 = vmov (!%p194_p2), 0.0   ;;  %v1613_v2 = vld [vmem:[%s2155_s1 + $0x8] sm:$0xff] (!%p194_p2)   ;;  %vm1654_vm0 = vmmov (!%p194_p2), 0   ;;  %s229_s24 = smul.u32 (!%p194_p2), 50, %s1691_s19  ;;  %v1614_v3 = vld [vmem:[%s2155_s1 + $0x10] sm:$0xff] (!%p194_p2)   ;;  %v805_v34 = vlaneseq (!%p194_p2) }
   0x6   : > { %197 = sbr.rel (%p194_p2) target bundleno = 417 (0x1a1), region = 32  ;;  %1470 = vmatprep.subr.bf16.mxu0 (!%p194_p2), %v1653_v1  ;;  %1586 = vmatprep.subr.bf16.mxu1 (!%p194_p2), %v1653_v1  ;;  %v1615_v4 = vld [vmem:[%s2155_s1 + $0x18] sm:$0xff] (!%p194_p2)   ;;  %v1616_v5 = vld [vmem:[%s2155_s1 + $0x20] sm:$0xff] (!%p194_p2)   ;;  %v1617_v6 = vld [vmem:[%s2155_s1 + $0x28] sm:$0xff] (!%p194_p2)   ;;  %p241_p4 = scmp.lt.s32.totalorder (!%p194_p2), %s1691_s19, 1 }
   0x7   : > { %1471 = vmatpush3.bf16.msra.mxu0 (!%p194_p2), %v1612_v0  ;;  %1486 = vmatprep.mubr.msk.bf16.mxu0 (!%p194_p2), %vm1654_vm0, %v1653_v1  ;;  %p230_p3 = scmp.lt.s32.totalorder (!%p194_p2), %s229_s24, 99  ;;  %v1618_v7 = vld [vmem:[%s2155_s1 + $0x30] sm:$0xff] (!%p194_p2)   ;;  %v1619_v8 = vld [vmem:[%s2155_s1 + $0x38] sm:$0xff] (!%p194_p2)   ;;  %s804_s16 = smul.u32 (!%p194_p2), 400, %s1691_s19  ;;  %v1820_v35 = vshrl.u32 (!%p194_p2), %v805_v34, 7 }
   0x8   : > { %1472 = vmatprep.subr.bf16.mxu0 (!%p194_p2), %v1653_v1  ;;  %1594 = vmatpush3.bf16.msra.mxu1 (!%p194_p2), %v1612_v0  ;;  %v1831_v39 = vld [vmem:[%s2156_s2] ss:$0 sm:$0xff] (!%p194_p2) }
   0x9   : > { %1587 = vmatprep.subr.bf16.mxu1 (!%p194_p2), %v1653_v1  ;;  %1538 = vmatprep.mubr.msk.bf16.mxu1 (!%p194_p2), %vm1654_vm0, %v1653_v1  ;;  %v1822_v36 = vstv (!%p194_p2), %s804_s16  ;;  %v807_v37 = vadd.s32 (!%p194_p2), 8, %v1820_v35  ;;  %v808_v42 = vadd.s32 (!%p194_p2), 16, %v1820_v35  ;;  %v809_v47 = vadd.s32 (!%p194_p2), 24, %v1820_v35 }
   0xa   : > { %v857_v38 = vadd.s32 (!%p194_p2), %v1822_v36, %v1820_v35  ;;  %v810_v0 = vadd.s32 (!%p194_p2), 32, %v1820_v35 }
   0xb   : > { %1473 = vmatpush3.bf16.msra.mxu0 (!%p194_p2), %v1613_v2  ;;  %v858_v40 = vadd.s32 (!%p194_p2), %v1822_v36, %v807_v37  ;;  %v859_v54 = vadd.s32 (!%p194_p2), %v1822_v36, %v808_v42  ;;  %v860_v61 = vadd.s32 (!%p194_p2), %v1822_v36, %v809_v47 }
   0xc   : > { %1474 = vmatprep.subr.bf16.mxu0 (!%p194_p2), %v1653_v1  ;;  %1595 = vmatpush3.bf16.msra.mxu1 (!%p194_p2), %v1613_v2  ;;  %vm907_vm1 = vcmp.lt.s32.totalorder (!%p194_p2), %v857_v38, 798 }
   0xd   : > { %s2161_s24 = smov (!%p230_p3, %s229_s24), 99  ;;  %1588 = vmatprep.subr.bf16.mxu1 %v1653_v1  ;;  %vm908_vm2 = vcmp.lt.s32.totalorder %v858_v40, 798  ;;  %vm909_vm3 = vcmp.lt.s32.totalorder %v859_v54, 798  ;;  %vm910_vm4 = vcmp.lt.s32.totalorder %v860_v61, 798  ;;  %s2163_s19 = smov (!%p241_p4, %s1691_s19), 1 }
   0xe   : > { %s1397_s27 = sshll.u32 %s2161_s24, 2  ;;  %s1398_s17 = sshll.u32 %s2161_s24, 3 }
   0xf   : > { %s1721_s30 = scalar_lea.vmem %s2154_s0, %s1397_s27  ;;  %1475 = vmatpush3.bf16.msra.mxu0 %v1614_v3  ;;  %s1837_s25 = scalar_lea.vmem %s2157_s3, %s1398_s17 }
  0x10   : > { %1476 = vmatprep.subr.bf16.mxu0 %v1653_v1  ;;  %1596 = vmatpush3.bf16.msra.mxu1 %v1614_v3  ;;  %v1620_v9 = vld [vmem:[%s1721_s30] sm:$0xff]   ;;  %v1627_v10 = vld [vmem:[%s1721_s30 + $0x68] sm:$0xff]   ;;  %v1629_v12 = vld [vmem:[%s1721_s30 + $0x70] sm:$0xff]   ;;  %s1399_s24 = sshll.u32 %s2163_s19, 3 }
  0x11   : > { %1589 = vmatprep.subr.bf16.mxu1 %v1653_v1  ;;  %v1621_v11 = vld [vmem:[%s1721_s30 + $0x8] sm:$0xff]   ;;  %v1622_v13 = vld [vmem:[%s1721_s30 + $0x10] sm:$0xff]   ;;  %v1631_v14 = vld [vmem:[%s1721_s30 + $0x78] sm:$0xff]   ;;  %s244_s28 = scalar_lea.vmem %s2158_s4, %s1399_s24  ;;  %s248_s6 = scalar_lea.vmem %s2159_s5, %s1399_s24 }
  0x12   : > { %v1623_v15 = vld [vmem:[%s1721_s30 + $0x18] sm:$0xff]   ;;  %v1633_v16 = vld [vmem:[%s1721_s30 + $0x80] sm:$0xff]   ;;  %v1635_v18 = vld [vmem:[%s1721_s30 + $0x88] sm:$0xff]  }
  0x13   : > { %1477 = vmatpush3.bf16.msra.mxu0 %v1615_v4  ;;  %v1624_v17 = vld [vmem:[%s1721_s30 + $0x20] sm:$0xff]   ;;  %v1625_v19 = vld [vmem:[%s1721_s30 + $0x28] sm:$0xff]   ;;  %v1637_v20 = vld [vmem:[%s1721_s30 + $0x90] sm:$0xff]  }
  0x14   : > { %1478 = vmatprep.subr.bf16.mxu0 %v1653_v1  ;;  %1597 = vmatpush3.bf16.msra.mxu1 %v1615_v4  ;;  %v1626_v21 = vld [vmem:[%s1721_s30 + $0x30] sm:$0xff]   ;;  %v1639_v22 = vld [vmem:[%s1721_s30 + $0x98] sm:$0xff]   ;;  %v1640_v24 = vld [vmem:[%s1721_s30 + $0xa0] sm:$0xff]  }
  0x15   : > { %1590 = vmatprep.subr.bf16.mxu1 %v1653_v1  ;;  %v1628_v23 = vld [vmem:[%s1721_s30 + $0x38] sm:$0xff]   ;;  %v1630_v25 = vld [vmem:[%s1721_s30 + $0x40] sm:$0xff]   ;;  %v1641_v26 = vld [vmem:[%s1721_s30 + $0xa8] sm:$0xff]  }
  0x16   : > { %v1632_v27 = vld [vmem:[%s1721_s30 + $0x48] sm:$0xff]   ;;  %v1642_v28 = vld [vmem:[%s1721_s30 + $0xb0] sm:$0xff]   ;;  %v1643_v30 = vld [vmem:[%s1721_s30 + $0xb8] sm:$0xff]  }
  0x17   : > { %1479 = vmatpush3.bf16.msra.mxu0 %v1616_v5  ;;  %v1634_v29 = vld [vmem:[%s1721_s30 + $0x50] sm:$0xff]   ;;  %v1636_v31 = vld [vmem:[%s1721_s30 + $0x58] sm:$0xff]   ;;  %v1644_v32 = vld [vmem:[%s1721_s30 + $0xc0] sm:$0xff]  }
  0x18   : > { %1480 = vmatprep.subr.bf16.mxu0 %v1653_v1  ;;  %1598 = vmatpush3.bf16.msra.mxu1 %v1616_v5  ;;  %v1638_v33 = vld [vmem:[%s1721_s30 + $0x60] sm:$0xff]   ;;  %v811_v5 = vadd.s32 40, %v1820_v35 }
  0x19   : > { %1591 = vmatprep.subr.bf16.mxu1 %v1653_v1 }
  0x1b   : > { %1481 = vmatpush3.bf16.msra.mxu0 %v1617_v6 }
  0x1c   : > { %1482 = vmatprep.subr.bf16.mxu0 %v1653_v1  ;;  %1599 = vmatpush3.bf16.msra.mxu1 %v1617_v6 }
  0x1d   : > { %1592 = vmatprep.subr.bf16.mxu1 %v1653_v1 }
  0x1f   : > { %1483 = vmatpush3.bf16.msra.mxu0 %v1618_v7 }
  0x20   : > { %1484 = vmatprep.subr.bf16.mxu0 %v1653_v1  ;;  %1600 = vmatpush3.bf16.msra.mxu1 %v1618_v7 }
  0x21   : > { %1593 = vmatprep.subr.bf16.mxu1 %v1653_v1 }
  0x23   : > { %1485 = vmatpush3.bf16.msra.mxu0 %v1619_v8 }
  0x24   : > { %1601 = vmatpush3.bf16.msra.mxu1 %v1619_v8 }
  0x26   : > { %1487 = vmatmul.mubr.bf16.vlgmr.msra.gmra.mrb[0].mxu0 %v1620_v9 }
  0x27   : > { %1490 = vmatprep.mubr.msk.bf16.mxu0 %vm1654_vm0, %v1653_v1  ;;  %1539 = vmatmul.mubr.bf16.vlgmr.msra.gmra.mrb[0].mxu1 %v1627_v10 }
  0x28   : > { %1542 = vmatprep.mubr.msk.bf16.mxu1 %vm1654_vm0, %v1653_v1 }
  0x2e   : > { %1491 = vmatmul.mubr.bf16.gmra.mrb[4].mxu0 %v1621_v11 }
  0x2f   : > { %1494 = vmatprep.mubr.msk.bf16.mxu0 %vm1654_vm0, %v1653_v1  ;;  %1543 = vmatmul.mubr.bf16.gmra.mrb[4].mxu1 %v1629_v12 }
  0x30   : > { %1546 = vmatprep.mubr.msk.bf16.mxu1 %vm1654_vm0, %v1653_v1 }
  0x36   : > { %1495 = vmatmul.mubr.bf16.gmra.mrb[8].mxu0 %v1622_v13 }
  0x37   : > { %1498 = vmatprep.mubr.msk.bf16.mxu0 %vm1654_vm0, %v1653_v1  ;;  %1547 = vmatmul.mubr.bf16.gmra.mrb[8].mxu1 %v1631_v14  ;;  %v861_v14 = vadd.s32 %v1822_v36, %v810_v0 }
  0x38   : > { %1550 = vmatprep.mubr.msk.bf16.mxu1 %vm1654_vm0, %v1653_v1 }
  0x39   : > { %vm911_vm5 = vcmp.lt.s32.totalorder %v861_v14, 798  ;;  %v816_v14 = vadd.s32 80, %v1820_v35 }
  0x3e   : > { %1499 = vmatmul.mubr.bf16.gmra.mrb[12].mxu0 %v1623_v15 }
  0x3f   : > { %1502 = vmatprep.mubr.msk.bf16.mxu0 %vm1654_vm0, %v1653_v1  ;;  %1551 = vmatmul.mubr.bf16.gmra.mrb[12].mxu1 %v1633_v16 }
  0x40   : > { %1554 = vmatprep.mubr.msk.bf16.mxu1 %vm1654_vm0, %v1653_v1 }
  0x46   : > { %1503 = vmatmul.mubr.bf16.gmra.mrb[16].mxu0 %v1624_v17 }
  0x47   : > { %1506 = vmatprep.mubr.msk.bf16.mxu0 %vm1654_vm0, %v1653_v1  ;;  %1555 = vmatmul.mubr.bf16.gmra.mrb[16].mxu1 %v1635_v18 }
  0x48   : > { %1558 = vmatprep.mubr.msk.bf16.mxu1 %vm1654_vm0, %v1653_v1 }
  0x4e   : > { %1507 = vmatmul.mubr.bf16.gmra.mrb[20].mxu0 %v1625_v19 }
  0x4f   : > { %1510 = vmatprep.mubr.msk.bf16.mxu0 %vm1654_vm0, %v1653_v1  ;;  %1559 = vmatmul.mubr.bf16.gmra.mrb[20].mxu1 %v1637_v20 }
  0x50   : > { %1562 = vmatprep.mubr.msk.bf16.mxu1 %vm1654_vm0, %v1653_v1 }
  0x56   : > { %1511 = vmatmul.mubr.bf16.gmra.mrb[24].mxu0 %v1626_v21  ;;  %v862_v21 = vadd.s32 %v1822_v36, %v811_v5 }
  0x57   : > { %1514 = vmatprep.mubr.msk.bf16.mxu0 %vm1654_vm0, %v1653_v1  ;;  %1563 = vmatmul.mubr.bf16.gmra.mrb[24].mxu1 %v1639_v22 }
  0x58   : > { %1566 = vmatprep.mubr.msk.bf16.mxu1 %vm1654_vm0, %v1653_v1  ;;  %vm912_vm6 = vcmp.lt.s32.totalorder %v862_v21, 798 }
  0x5e   : > { %1515 = vmatmul.mubr.bf16.gmra.mrb[28].mxu0 %v1628_v23 }
  0x5f   : > { %1518 = vmatprep.mubr.msk.bf16.mxu0 %vm1654_vm0, %v1653_v1  ;;  %1567 = vmatmul.mubr.bf16.gmra.mrb[28].mxu1 %v1640_v24  ;;  %v812_v24 = vadd.s32 48, %v1820_v35 }
  0x60   : > { %1570 = vmatprep.mubr.msk.bf16.mxu1 %vm1654_vm0, %v1653_v1 }
  0x66   : > { %1519 = vmatmul.mubr.bf16.gmra.mrb[32].mxu0 %v1630_v25 }
  0x67   : > { %1522 = vmatprep.mubr.msk.bf16.mxu0 %vm1654_vm0, %v1653_v1  ;;  %1571 = vmatmul.mubr.bf16.gmra.mrb[32].mxu1 %v1641_v26 }
  0x68   : > { %1574 = vmatprep.mubr.msk.bf16.mxu1 %vm1654_vm0, %v1653_v1 }
  0x6e   : > { %1523 = vmatmul.mubr.bf16.gmra.mrb[36].mxu0 %v1632_v27 }
  0x6f   : > { %1526 = vmatprep.mubr.msk.bf16.mxu0 %vm1654_vm0, %v1653_v1  ;;  %1575 = vmatmul.mubr.bf16.gmra.mrb[36].mxu1 %v1642_v28 }
  0x70   : > { %1578 = vmatprep.mubr.msk.bf16.mxu1 %vm1654_vm0, %v1653_v1 }
  0x76   : > { %1527 = vmatmul.mubr.bf16.gmra.mrb[40].mxu0 %v1634_v29  ;;  %v813_v29 = vadd.s32 56, %v1820_v35 }
  0x77   : > { %1530 = vmatprep.mubr.msk.bf16.mxu0 %vm1654_vm0, %v1653_v1  ;;  %1579 = vmatmul.mubr.bf16.gmra.mrb[40].mxu1 %v1643_v30 }
  0x78   : > { %1582 = vmatprep.mubr.msk.bf16.mxu1 %vm1654_vm0, %v1653_v1 }
  0x7e   : > { %1531 = vmatmul.mubr.bf16.gmra.mrb[44].mxu0 %v1636_v31 }
  0x7f   : > { %1534 = vmatprep.mubr.msk.bf16.mxu0 %vm1654_vm0, %v1653_v1  ;;  %1583 = vmatmul.mubr.bf16.gmra.mrb[44].mxu1 %v1644_v32 }
  0x86   : > { %1535 = vmatmul.mubr.bf16.gmra.mrb[48].mxu0 %v1638_v33 }
  0xf9   : > { %v555_v41 = vpop.f32.mrb[0].mxu0 }
  0xfa   : > { %v556_v43 = vadd.f32 %v1831_v39, %v555_v41  ;;  %v1488_v44 = vpop.f32.mrb[1].mxu0  ;;  %v659_v45 = vpop.f32.mrb[0].mxu1  ;;  %v863_v41 = vadd.s32 %v1822_v36, %v812_v24 }
  0xfb   : > { %v558_v46 = vpop.f32.mrb[2].mxu0  ;;  %v1843_v48 = vadd.f32 %v1831_v39, %v659_v45  ;;  %v1540_v49 = vpop.f32.mrb[1].mxu1 }
  0xfc   : > { %754 = vst [vmem:[%s1837_s25] sm:$0xff] %v556_v43  ;;  %v1057_v50 = vsel %vm907_vm1, %v556_v43, 0.0  ;;  %v559_v51 = vadd.f32 %v1831_v39, %v558_v46  ;;  %v1489_v52 = vpop.f32.mrb[3].mxu0  ;;  %v662_v53 = vpop.f32.mrb[2].mxu1  ;;  %v864_v49 = vadd.s32 %v1822_v36, %v813_v29  ;;  %vm913_vm7 = vcmp.lt.s32.totalorder %v863_v41, 798 }
  0xfd   : > { %780 = vst [vmem:[%s1837_s25 + $0xd0] sm:$0xff] %v1843_v48  ;;  %v1851_v55 = vadd.f32 %v1831_v39, %v662_v53  ;;  %v1541_v56 = vpop.f32.mrb[3].mxu1  ;;  %v1162_v58 = vmul.f32 %v1057_v50, %v1057_v50  ;;  %v814_v52 = vadd.s32 64, %v1820_v35  ;;  %v867_v29 = vadd.s32 %v1822_v36, %v816_v14 }
  0xfe   : > { %755 = vst [vmem:[%s1837_s25 + $0x8] sm:$0xff] %v559_v51  ;;  %v1058_v57 = vsel %vm908_vm2, %v559_v51, 0.0  ;;  %vm914_vm8 = vcmp.lt.s32.totalorder %v864_v49, 798  ;;  %v821_v14 = vadd.s32 120, %v1820_v35 }
  0xff   : > { %v1107_v59 = vadd.f32 %v1058_v57, %v1057_v50  ;;  %v1163_v60 = vmul.f32 %v1058_v57, %v1058_v57  ;;  %781 = vst [vmem:[%s1837_s25 + $0xd8] sm:$0xff] %v1851_v55  ;;  %vm917_vm11 = vcmp.lt.s32.totalorder %v867_v29, 798 }
 0x101   : > { %v1212_v62 = vadd.f32 %v1163_v60, %v1162_v58  ;;  %v563_v63 = vpop.f32.mrb[4].mxu0  ;;  %v815_v58 = vadd.s32 72, %v1820_v35 }
 0x102   : > { %v564_v1 = vadd.f32 %v1831_v39, %v563_v63  ;;  %v1492_v2 = vpop.f32.mrb[5].mxu0  ;;  %v667_v3 = vpop.f32.mrb[4].mxu1 }
 0x103   : > { %v566_v4 = vpop.f32.mrb[6].mxu0  ;;  %v1861_v6 = vadd.f32 %v1831_v39, %v667_v3  ;;  %v1544_v7 = vpop.f32.mrb[5].mxu1  ;;  %v865_v3 = vadd.s32 %v1822_v36, %v814_v52 }
 0x104   : > { %756 = vst [vmem:[%s1837_s25 + $0x10] sm:$0xff] %v564_v1  ;;  %v1059_v8 = vsel %vm909_vm3, %v564_v1, 0.0  ;;  %v567_v9 = vadd.f32 %v1831_v39, %v566_v4  ;;  %v1493_v10 = vpop.f32.mrb[7].mxu0  ;;  %v670_v11 = vpop.f32.mrb[6].mxu1 }
 0x105   : > { %v1108_v12 = vadd.f32 %v1107_v59, %v1059_v8  ;;  %v1164_v13 = vmul.f32 %v1059_v8, %v1059_v8  ;;  %782 = vst [vmem:[%s1837_s25 + $0xe0] sm:$0xff] %v1861_v6  ;;  %v1869_v15 = vadd.f32 %v1831_v39, %v670_v11  ;;  %v1545_v16 = vpop.f32.mrb[7].mxu1  ;;  %v866_v11 = vadd.s32 %v1822_v36, %v815_v58 }
 0x106   : > { %757 = vst [vmem:[%s1837_s25 + $0x18] sm:$0xff] %v567_v9  ;;  %v1060_v17 = vsel %vm910_vm4, %v567_v9, 0.0  ;;  %vm915_vm9 = vcmp.lt.s32.totalorder %v865_v3, 798 }
 0x107   : > { %v1213_v18 = vadd.f32 %v1212_v62, %v1164_v13  ;;  %v1109_v19 = vadd.f32 %v1108_v12, %v1060_v17  ;;  %v1165_v20 = vmul.f32 %v1060_v17, %v1060_v17  ;;  %783 = vst [vmem:[%s1837_s25 + $0xe8] sm:$0xff] %v1869_v15  ;;  %vm916_vm10 = vcmp.lt.s32.totalorder %v866_v11, 798 }
 0x109   : > { %v1214_v22 = vadd.f32 %v1213_v18, %v1165_v20  ;;  %v571_v23 = vpop.f32.mrb[8].mxu0  ;;  %v817_v20 = vadd.s32 88, %v1820_v35 }
 0x10a   : > { %v572_v25 = vadd.f32 %v1831_v39, %v571_v23  ;;  %v1496_v26 = vpop.f32.mrb[9].mxu0  ;;  %v675_v27 = vpop.f32.mrb[8].mxu1 }
 0x10b   : > { %v574_v28 = vpop.f32.mrb[10].mxu0  ;;  %v1880_v30 = vadd.f32 %v1831_v39, %v675_v27  ;;  %v1548_v31 = vpop.f32.mrb[9].mxu1 }
 0x10c   : > { %758 = vst [vmem:[%s1837_s25 + $0x20] sm:$0xff] %v572_v25  ;;  %v1061_v32 = vsel %vm911_vm5, %v572_v25, 0.0  ;;  %v575_v33 = vadd.f32 %v1831_v39, %v574_v28  ;;  %v1497_v34 = vpop.f32.mrb[11].mxu0  ;;  %v678_v37 = vpop.f32.mrb[10].mxu1 }
 0x10d   : > { %v1110_v38 = vadd.f32 %v1109_v19, %v1061_v32  ;;  %v1166_v40 = vmul.f32 %v1061_v32, %v1061_v32  ;;  %784 = vst [vmem:[%s1837_s25 + $0xf0] sm:$0xff] %v1880_v30  ;;  %v1888_v42 = vadd.f32 %v1831_v39, %v678_v37  ;;  %v1549_v43 = vpop.f32.mrb[11].mxu1 }
 0x10e   : > { %759 = vst [vmem:[%s1837_s25 + $0x28] sm:$0xff] %v575_v33  ;;  %v1062_v44 = vsel %vm912_vm6, %v575_v33, 0.0 }
 0x10f   : > { %v1215_v45 = vadd.f32 %v1214_v22, %v1166_v40  ;;  %v1111_v46 = vadd.f32 %v1110_v38, %v1062_v44  ;;  %v1167_v47 = vmul.f32 %v1062_v44, %v1062_v44  ;;  %785 = vst [vmem:[%s1837_s25 + $0xf8] sm:$0xff] %v1888_v42  ;;  %v868_v40 = vadd.s32 %v1822_v36, %v817_v20 }
 0x110   : > { %v818_v44 = vadd.s32 96, %v1820_v35 }
 0x111   : > { %v1216_v50 = vadd.f32 %v1215_v45, %v1167_v47  ;;  %v579_v51 = vpop.f32.mrb[12].mxu0  ;;  %vm918_vm12 = vcmp.lt.s32.totalorder %v868_v40, 798  ;;  %v822_v40 = vadd.s32 128, %v1820_v35 }
 0x112   : > { %v580_v53 = vadd.f32 %v1831_v39, %v579_v51  ;;  %v1500_v54 = vpop.f32.mrb[13].mxu0  ;;  %v683_v56 = vpop.f32.mrb[12].mxu1 }
 0x113   : > { %v582_v57 = vpop.f32.mrb[14].mxu0  ;;  %v1899_v59 = vadd.f32 %v1831_v39, %v683_v56  ;;  %v1552_v60 = vpop.f32.mrb[13].mxu1 }
 0x114   : > { %760 = vst [vmem:[%s1837_s25 + $0x30] sm:$0xff] %v580_v53  ;;  %v1063_v61 = vsel %vm913_vm7, %v580_v53, 0.0  ;;  %v583_v62 = vadd.f32 %v1831_v39, %v582_v57  ;;  %v1501_v63 = vpop.f32.mrb[15].mxu0  ;;  %v686_v0 = vpop.f32.mrb[14].mxu1 }
 0x115   : > { %v1112_v1 = vadd.f32 %v1111_v46, %v1063_v61  ;;  %v1168_v2 = vmul.f32 %v1063_v61, %v1063_v61  ;;  %786 = vst [vmem:[%s1837_s25 + $0x100] sm:$0xff] %v1899_v59  ;;  %v1907_v4 = vadd.f32 %v1831_v39, %v686_v0  ;;  %v1553_v5 = vpop.f32.mrb[15].mxu1  ;;  %v869_v61 = vadd.s32 %v1822_v36, %v818_v44 }
 0x116   : > { %761 = vst [vmem:[%s1837_s25 + $0x38] sm:$0xff] %v583_v62  ;;  %v1064_v7 = vsel %vm914_vm8, %v583_v62, 0.0 }
 0x117   : > { %v1217_v8 = vadd.f32 %v1216_v50, %v1168_v2  ;;  %v1113_v9 = vadd.f32 %v1112_v1, %v1064_v7  ;;  %v1169_v10 = vmul.f32 %v1064_v7, %v1064_v7  ;;  %787 = vst [vmem:[%s1837_s25 + $0x108] sm:$0xff] %v1907_v4  ;;  %v819_v50 = vadd.s32 104, %v1820_v35 }
 0x118   : > { %vm919_vm13 = vcmp.lt.s32.totalorder %v869_v61, 798 }
 0x119   : > { %v1218_v12 = vadd.f32 %v1217_v8, %v1169_v10  ;;  %v587_v13 = vpop.f32.mrb[16].mxu0  ;;  %v870_v5 = vadd.s32 %v1822_v36, %v819_v50 }
 0x11a   : > { %v588_v16 = vadd.f32 %v1831_v39, %v587_v13  ;;  %v1504_v17 = vpop.f32.mrb[17].mxu0  ;;  %v691_v18 = vpop.f32.mrb[16].mxu1 }
 0x11b   : > { %v590_v19 = vpop.f32.mrb[18].mxu0  ;;  %v1918_v21 = vadd.f32 %v1831_v39, %v691_v18  ;;  %v1556_v22 = vpop.f32.mrb[17].mxu1  ;;  %vm920_vm14 = vcmp.lt.s32.totalorder %v870_v5, 798 }
 0x11c   : > { %762 = vst [vmem:[%s1837_s25 + $0x40] sm:$0xff] %v588_v16  ;;  %v1065_v23 = vsel %vm915_vm9, %v588_v16, 0.0  ;;  %v591_v24 = vadd.f32 %v1831_v39, %v590_v19  ;;  %v1505_v25 = vpop.f32.mrb[19].mxu0  ;;  %v694_v26 = vpop.f32.mrb[18].mxu1 }
 0x11d   : > { %v1114_v27 = vadd.f32 %v1113_v9, %v1065_v23  ;;  %v1170_v28 = vmul.f32 %v1065_v23, %v1065_v23  ;;  %788 = vst [vmem:[%s1837_s25 + $0x110] sm:$0xff] %v1918_v21  ;;  %v1926_v31 = vadd.f32 %v1831_v39, %v694_v26  ;;  %v1557_v32 = vpop.f32.mrb[19].mxu1  ;;  %v820_v9 = vadd.s32 112, %v1820_v35 }
 0x11e   : > { %763 = vst [vmem:[%s1837_s25 + $0x48] sm:$0xff] %v591_v24  ;;  %v1066_v33 = vsel %vm916_vm10, %v591_v24, 0.0 }
 0x11f   : > { %v1219_v34 = vadd.f32 %v1218_v12, %v1170_v28  ;;  %v1115_v37 = vadd.f32 %v1114_v27, %v1066_v33  ;;  %v1171_v38 = vmul.f32 %v1066_v33, %v1066_v33  ;;  %789 = vst [vmem:[%s1837_s25 + $0x118] sm:$0xff] %v1926_v31  ;;  %v871_v25 = vadd.s32 %v1822_v36, %v820_v9 }
 0x121   : > { %v1220_v41 = vadd.f32 %v1219_v34, %v1171_v38  ;;  %v595_v43 = vpop.f32.mrb[20].mxu0  ;;  %v872_v34 = vadd.s32 %v1822_v36, %v821_v14  ;;  %vm921_vm15 = vcmp.lt.s32.totalorder %v871_v25, 798 }
 0x122   : > { %v596_v45 = vadd.f32 %v1831_v39, %v595_v43  ;;  %v1508_v46 = vpop.f32.mrb[21].mxu0  ;;  %v699_v47 = vpop.f32.mrb[20].mxu1 }
 0x123   : > { %v598_v49 = vpop.f32.mrb[22].mxu0  ;;  %v1937_v51 = vadd.f32 %v1831_v39, %v699_v47  ;;  %v1560_v52 = vpop.f32.mrb[21].mxu1  ;;  %vm922_vm0 = vcmp.lt.s32.totalorder %v872_v34, 798  ;;  %v823_v46 = vadd.s32 136, %v1820_v35 }
 0x124   : > { %764 = vst [vmem:[%s1837_s25 + $0x50] sm:$0xff] %v596_v45  ;;  %v1067_v53 = vsel %vm917_vm11, %v596_v45, 0.0  ;;  %v599_v54 = vadd.f32 %v1831_v39, %v598_v49  ;;  %v1509_v56 = vpop.f32.mrb[23].mxu0  ;;  %v702_v57 = vpop.f32.mrb[22].mxu1 }
 0x125   : > { %v1116_v58 = vadd.f32 %v1115_v37, %v1067_v53  ;;  %v1172_v60 = vmul.f32 %v1067_v53, %v1067_v53  ;;  %790 = vst [vmem:[%s1837_s25 + $0x120] sm:$0xff] %v1937_v51  ;;  %v1945_v62 = vadd.f32 %v1831_v39, %v702_v57  ;;  %v1561_v63 = vpop.f32.mrb[23].mxu1 }
 0x126   : > { %765 = vst [vmem:[%s1837_s25 + $0x58] sm:$0xff] %v599_v54  ;;  %v1068_v0 = vsel %vm918_vm12, %v599_v54, 0.0 }
 0x127   : > { %v1221_v1 = vadd.f32 %v1220_v41, %v1172_v60  ;;  %v1117_v2 = vadd.f32 %v1116_v58, %v1068_v0  ;;  %v1173_v3 = vmul.f32 %v1068_v0, %v1068_v0  ;;  %791 = vst [vmem:[%s1837_s25 + $0x128] sm:$0xff] %v1945_v62  ;;  %v873_v58 = vadd.s32 %v1822_v36, %v822_v40 }
 0x129   : > { %v1222_v7 = vadd.f32 %v1221_v1, %v1173_v3  ;;  %v603_v8 = vpop.f32.mrb[24].mxu0  ;;  %v874_v3 = vadd.s32 %v1822_v36, %v823_v46  ;;  %vm923_vm1 = vcmp.lt.s32.totalorder %v873_v58, 798 }
 0x12a   : > { %v604_v10 = vadd.f32 %v1831_v39, %v603_v8  ;;  %v1512_v11 = vpop.f32.mrb[25].mxu0  ;;  %v707_v12 = vpop.f32.mrb[24].mxu1  ;;  %v824_v8 = vadd.s32 144, %v1820_v35 }
 0x12b   : > { %v606_v13 = vpop.f32.mrb[26].mxu0  ;;  %v1956_v16 = vadd.f32 %v1831_v39, %v707_v12  ;;  %v1564_v17 = vpop.f32.mrb[25].mxu1  ;;  %vm924_vm2 = vcmp.lt.s32.totalorder %v874_v3, 798 }
 0x12c   : > { %766 = vst [vmem:[%s1837_s25 + $0x60] sm:$0xff] %v604_v10  ;;  %v1069_v18 = vsel %vm919_vm13, %v604_v10, 0.0  ;;  %v607_v19 = vadd.f32 %v1831_v39, %v606_v13  ;;  %v1513_v20 = vpop.f32.mrb[27].mxu0  ;;  %v710_v22 = vpop.f32.mrb[26].mxu1  ;;  %v825_v13 = vadd.s32 152, %v1820_v35  ;;  %v875_v25 = vadd.s32 %v1822_v36, %v824_v8 }
 0x12d   : > { %v1118_v23 = vadd.f32 %v1117_v2, %v1069_v18  ;;  %v1174_v24 = vmul.f32 %v1069_v18, %v1069_v18  ;;  %792 = vst [vmem:[%s1837_s25 + $0x130] sm:$0xff] %v1956_v16  ;;  %v1964_v26 = vadd.f32 %v1831_v39, %v710_v22  ;;  %v1565_v27 = vpop.f32.mrb[27].mxu1 }
 0x12e   : > { %767 = vst [vmem:[%s1837_s25 + $0x68] sm:$0xff] %v607_v19  ;;  %v1070_v28 = vsel %vm920_vm14, %v607_v19, 0.0  ;;  %vm925_vm3 = vcmp.lt.s32.totalorder %v875_v25, 798 }
 0x12f   : > { %v1223_v29 = vadd.f32 %v1222_v7, %v1174_v24  ;;  %v1119_v32 = vadd.f32 %v1118_v23, %v1070_v28  ;;  %v1175_v33 = vmul.f32 %v1070_v28, %v1070_v28  ;;  %793 = vst [vmem:[%s1837_s25 + $0x138] sm:$0xff] %v1964_v26 }
 0x131   : > { %v1224_v37 = vadd.f32 %v1223_v29, %v1175_v33  ;;  %v611_v38 = vpop.f32.mrb[28].mxu0 }
 0x132   : > { %v612_v41 = vadd.f32 %v1831_v39, %v611_v38  ;;  %v1516_v43 = vpop.f32.mrb[29].mxu0  ;;  %v715_v44 = vpop.f32.mrb[28].mxu1 }
 0x133   : > { %v614_v45 = vpop.f32.mrb[30].mxu0  ;;  %v1975_v47 = vadd.f32 %v1831_v39, %v715_v44  ;;  %v1568_v49 = vpop.f32.mrb[29].mxu1 }
 0x134   : > { %768 = vst [vmem:[%s1837_s25 + $0x70] sm:$0xff] %v612_v41  ;;  %v1071_v50 = vsel %vm921_vm15, %v612_v41, 0.0  ;;  %v615_v52 = vadd.f32 %v1831_v39, %v614_v45  ;;  %v1517_v53 = vpop.f32.mrb[31].mxu0  ;;  %v718_v54 = vpop.f32.mrb[30].mxu1  ;;  %v826_v41 = vadd.s32 160, %v1820_v35  ;;  %v827_v49 = vadd.s32 168, %v1820_v35 }
 0x135   : > { %v1120_v56 = vadd.f32 %v1119_v32, %v1071_v50  ;;  %v1176_v57 = vmul.f32 %v1071_v50, %v1071_v50  ;;  %794 = vst [vmem:[%s1837_s25 + $0x140] sm:$0xff] %v1975_v47  ;;  %v1983_v60 = vadd.f32 %v1831_v39, %v718_v54  ;;  %v1569_v61 = vpop.f32.mrb[31].mxu1 }
 0x136   : > { %769 = vst [vmem:[%s1837_s25 + $0x78] sm:$0xff] %v615_v52  ;;  %v1072_v63 = vsel %vm922_vm0, %v615_v52, 0.0  ;;  %v878_v8 = vadd.s32 %v1822_v36, %v827_v49  ;;  %v830_v49 = vadd.s32 192, %v1820_v35 }
 0x137   : > { %v1225_v0 = vadd.f32 %v1224_v37, %v1176_v57  ;;  %v1121_v1 = vadd.f32 %v1120_v56, %v1072_v63  ;;  %v1177_v2 = vmul.f32 %v1072_v63, %v1072_v63  ;;  %795 = vst [vmem:[%s1837_s25 + $0x148] sm:$0xff] %v1983_v60  ;;  %v876_v37 = vadd.s32 %v1822_v36, %v825_v13 }
 0x138   : > { %v877_v63 = vadd.s32 %v1822_v36, %v826_v41  ;;  %vm928_vm6 = vcmp.lt.s32.totalorder %v878_v8, 798 }
 0x139   : > { %v1226_v5 = vadd.f32 %v1225_v0, %v1177_v2  ;;  %v619_v7 = vpop.f32.mrb[32].mxu0  ;;  %vm926_vm4 = vcmp.lt.s32.totalorder %v876_v37, 798 }
 0x13a   : > { %v620_v9 = vadd.f32 %v1831_v39, %v619_v7  ;;  %v1520_v10 = vpop.f32.mrb[33].mxu0  ;;  %v723_v11 = vpop.f32.mrb[32].mxu1  ;;  %vm927_vm5 = vcmp.lt.s32.totalorder %v877_v63, 798 }
 0x13b   : > { %v622_v12 = vpop.f32.mrb[34].mxu0  ;;  %v1994_v14 = vadd.f32 %v1831_v39, %v723_v11  ;;  %v1572_v17 = vpop.f32.mrb[33].mxu1  ;;  %v828_v11 = vadd.s32 176, %v1820_v35 }
 0x13c   : > { %770 = vst [vmem:[%s1837_s25 + $0x80] sm:$0xff] %v620_v9  ;;  %v1073_v18 = vsel %vm923_vm1, %v620_v9, 0.0  ;;  %v623_v19 = vadd.f32 %v1831_v39, %v622_v12  ;;  %v1521_v20 = vpop.f32.mrb[35].mxu0  ;;  %v726_v22 = vpop.f32.mrb[34].mxu1 }
 0x13d   : > { %v1122_v23 = vadd.f32 %v1121_v1, %v1073_v18  ;;  %v1178_v24 = vmul.f32 %v1073_v18, %v1073_v18  ;;  %796 = vst [vmem:[%s1837_s25 + $0x150] sm:$0xff] %v1994_v14  ;;  %v2002_v27 = vadd.f32 %v1831_v39, %v726_v22  ;;  %v1573_v28 = vpop.f32.mrb[35].mxu1 }
 0x13e   : > { %771 = vst [vmem:[%s1837_s25 + $0x88] sm:$0xff] %v623_v19  ;;  %v1074_v29 = vsel %vm924_vm2, %v623_v19, 0.0  ;;  %v829_v19 = vadd.s32 184, %v1820_v35 }
 0x13f   : > { %v1227_v32 = vadd.f32 %v1226_v5, %v1178_v24  ;;  %v1123_v33 = vadd.f32 %v1122_v23, %v1074_v29  ;;  %v1179_v34 = vmul.f32 %v1074_v29, %v1074_v29  ;;  %797 = vst [vmem:[%s1837_s25 + $0x158] sm:$0xff] %v2002_v27 }
 0x141   : > { %v1228_v38 = vadd.f32 %v1227_v32, %v1179_v34  ;;  %v627_v40 = vpop.f32.mrb[36].mxu0 }
 0x142   : > { %v628_v43 = vadd.f32 %v1831_v39, %v627_v40  ;;  %v1524_v44 = vpop.f32.mrb[37].mxu0  ;;  %v731_v45 = vpop.f32.mrb[36].mxu1 }
 0x143   : > { %v630_v46 = vpop.f32.mrb[38].mxu0  ;;  %v2013_v50 = vadd.f32 %v1831_v39, %v731_v45  ;;  %v1576_v52 = vpop.f32.mrb[37].mxu1  ;;  %v880_v44 = vadd.s32 %v1822_v36, %v829_v19 }
 0x144   : > { %772 = vst [vmem:[%s1837_s25 + $0x90] sm:$0xff] %v628_v43  ;;  %v1075_v53 = vsel %vm925_vm3, %v628_v43, 0.0  ;;  %v631_v54 = vadd.f32 %v1831_v39, %v630_v46  ;;  %v1525_v56 = vpop.f32.mrb[39].mxu0  ;;  %v734_v57 = vpop.f32.mrb[38].mxu1  ;;  %v832_v52 = vadd.s32 208, %v1820_v35 }
 0x145   : > { %v1124_v58 = vadd.f32 %v1123_v33, %v1075_v53  ;;  %v1180_v61 = vmul.f32 %v1075_v53, %v1075_v53  ;;  %798 = vst [vmem:[%s1837_s25 + $0x160] sm:$0xff] %v2013_v50  ;;  %v2021_v0 = vadd.f32 %v1831_v39, %v734_v57  ;;  %v1577_v1 = vpop.f32.mrb[39].mxu1  ;;  %v879_v33 = vadd.s32 %v1822_v36, %v828_v11 }
 0x146   : > { %773 = vst [vmem:[%s1837_s25 + $0x98] sm:$0xff] %v631_v54  ;;  %v1076_v2 = vsel %vm926_vm4, %v631_v54, 0.0  ;;  %vm930_vm8 = vcmp.lt.s32.totalorder %v880_v44, 798  ;;  %v833_v1 = vadd.s32 216, %v1820_v35 }
 0x147   : > { %v1229_v3 = vadd.f32 %v1228_v38, %v1180_v61  ;;  %v1125_v5 = vadd.f32 %v1124_v58, %v1076_v2  ;;  %v1181_v7 = vmul.f32 %v1076_v2, %v1076_v2  ;;  %799 = vst [vmem:[%s1837_s25 + $0x168] sm:$0xff] %v2021_v0  ;;  %vm929_vm7 = vcmp.lt.s32.totalorder %v879_v33, 798 }
 0x148   : > { %v831_v58 = vadd.s32 200, %v1820_v35  ;;  %v836_v33 = vadd.s32 240, %v1820_v35 }
 0x149   : > { %v1230_v9 = vadd.f32 %v1229_v3, %v1181_v7  ;;  %v635_v10 = vpop.f32.mrb[40].mxu0 }
 0x14a   : > { %v636_v12 = vadd.f32 %v1831_v39, %v635_v10  ;;  %v1528_v13 = vpop.f32.mrb[41].mxu0  ;;  %v739_v17 = vpop.f32.mrb[40].mxu1  ;;  %v881_v10 = vadd.s32 %v1822_v36, %v830_v49 }
 0x14b   : > { %v638_v18 = vpop.f32.mrb[42].mxu0  ;;  %v2032_v20 = vadd.f32 %v1831_v39, %v739_v17  ;;  %v1580_v22 = vpop.f32.mrb[41].mxu1  ;;  %v883_v13 = vadd.s32 %v1822_v36, %v832_v52  ;;  %v834_v17 = vadd.s32 224, %v1820_v35 }
 0x14c   : > { %774 = vst [vmem:[%s1837_s25 + $0xa0] sm:$0xff] %v636_v12  ;;  %v1077_v23 = vsel %vm927_vm5, %v636_v12, 0.0  ;;  %v639_v24 = vadd.f32 %v1831_v39, %v638_v18  ;;  %v1529_v25 = vpop.f32.mrb[43].mxu0  ;;  %v742_v28 = vpop.f32.mrb[42].mxu1  ;;  %vm931_vm9 = vcmp.lt.s32.totalorder %v881_v10, 798 }
 0x14d   : > { %v1126_v29 = vadd.f32 %v1125_v5, %v1077_v23  ;;  %v1182_v32 = vmul.f32 %v1077_v23, %v1077_v23  ;;  %800 = vst [vmem:[%s1837_s25 + $0x170] sm:$0xff] %v2032_v20  ;;  %v2040_v34 = vadd.f32 %v1831_v39, %v742_v28  ;;  %v1581_v37 = vpop.f32.mrb[43].mxu1  ;;  %v884_v25 = vadd.s32 %v1822_v36, %v833_v1 }
 0x14e   : > { %775 = vst [vmem:[%s1837_s25 + $0xa8] sm:$0xff] %v639_v24  ;;  %v1078_v38 = vsel %vm928_vm6, %v639_v24, 0.0  ;;  %v882_v24 = vadd.s32 %v1822_v36, %v831_v58  ;;  %v835_v28 = vadd.s32 232, %v1820_v35  ;;  %vm933_vm10 = vcmp.lt.s32.totalorder %v883_v13, 798 }
 0x14f   : > { %v1231_v40 = vadd.f32 %v1230_v9, %v1182_v32  ;;  %v1127_v41 = vadd.f32 %v1126_v29, %v1078_v38  ;;  %v1183_v43 = vmul.f32 %v1078_v38, %v1078_v38  ;;  %801 = vst [vmem:[%s1837_s25 + $0x178] sm:$0xff] %v2040_v34  ;;  %vm934_vm12 = vcmp.lt.s32.totalorder %v884_v25, 798 }
 0x150   : > { %vm932_vm11 = vcmp.lt.s32.totalorder %v882_v24, 798  ;;  %v886_v49 = vadd.s32 %v1822_v36, %v835_v28  ;;  %v840_v13 = vadd.s32 272, %v1820_v35  ;;  %v842_v28 = vadd.s32 288, %v1820_v35 }
 0x151   : > { %v1232_v45 = vadd.f32 %v1231_v40, %v1183_v43  ;;  %v643_v46 = vpop.f32.mrb[44].mxu0  ;;  %v885_v40 = vadd.s32 %v1822_v36, %v834_v17  ;;  %v837_v43 = vadd.s32 248, %v1820_v35 }
 0x152   : > { %v644_v53 = vadd.f32 %v1831_v39, %v643_v46  ;;  %v1532_v54 = vpop.f32.mrb[45].mxu0  ;;  %v747_v56 = vpop.f32.mrb[44].mxu1  ;;  %vm936_vm14 = vcmp.lt.s32.totalorder %v886_v49, 798 }
 0x153   : > { %v646_v57 = vpop.f32.mrb[46].mxu0  ;;  %v2052_v61 = vadd.f32 %v1831_v39, %v747_v56  ;;  %v1584_v63 = vpop.f32.mrb[45].mxu1  ;;  %v1083_v54 = vsel %vm933_vm10, %v1843_v48, 0.0  ;;  %v887_v56 = vadd.s32 %v1822_v36, %v836_v33  ;;  %vm935_vm13 = vcmp.lt.s32.totalorder %v885_v40, 798 }
 0x154   : > { %776 = vst [vmem:[%s1837_s25 + $0xb0] sm:$0xff] %v644_v53  ;;  %v1079_v2 = vsel %vm929_vm7, %v644_v53, 0.0  ;;  %v647_v3 = vadd.f32 %v1831_v39, %v646_v57  ;;  %v1533_v5 = vpop.f32.mrb[47].mxu0  ;;  %v750_v7 = vpop.f32.mrb[46].mxu1  ;;  %v838_v57 = vadd.s32 256, %v1820_v35 }
 0x155   : > { %v1128_v8 = vadd.f32 %v1127_v41, %v1079_v2  ;;  %v1184_v9 = vmul.f32 %v1079_v2, %v1079_v2  ;;  %802 = vst [vmem:[%s1837_s25 + $0x180] sm:$0xff] %v2052_v61  ;;  %v2061_v11 = vadd.f32 %v1831_v39, %v750_v7  ;;  %v1585_v12 = vpop.f32.mrb[47].mxu1  ;;  %v839_v5 = vadd.s32 264, %v1820_v35 }
 0x156   : > { %777 = vst [vmem:[%s1837_s25 + $0xb8] sm:$0xff] %v647_v3  ;;  %v1080_v18 = vsel %vm930_vm8, %v647_v3, 0.0  ;;  %v888_v3 = vadd.s32 %v1822_v36, %v837_v43  ;;  %v1188_v7 = vmul.f32 %v1083_v54, %v1083_v54  ;;  %vm937_vm15 = vcmp.lt.s32.totalorder %v887_v56, 798 }
 0x157   : > { %v1233_v19 = vadd.f32 %v1232_v45, %v1184_v9  ;;  %v1129_v22 = vadd.f32 %v1128_v8, %v1080_v18  ;;  %v1185_v23 = vmul.f32 %v1080_v18, %v1080_v18  ;;  %803 = vst [vmem:[%s1837_s25 + $0x188] sm:$0xff] %v2061_v11  ;;  %v1085_v9 = vsel %vm935_vm13, %v1861_v6, 0.0 }
 0x158   : > { %v889_v10 = vadd.s32 %v1822_v36, %v838_v57  ;;  %vm938_vm0 = vcmp.lt.s32.totalorder %v888_v3, 798  ;;  %v1087_v6 = vsel %vm937_vm15, %v1880_v30, 0.0  ;;  %v845_v56 = vadd.s32 312, %v1820_v35 }
 0x159   : > { %v1234_v29 = vadd.f32 %v1233_v19, %v1185_v23  ;;  %v651_v32 = vpop.f32.mrb[48].mxu0  ;;  %v890_v19 = vadd.s32 %v1822_v36, %v839_v5  ;;  %v841_v23 = vadd.s32 280, %v1820_v35  ;;  %v1192_v40 = vmul.f32 %v1087_v6, %v1087_v6 }
 0x15a   : > { %v652_v37 = vadd.f32 %v1831_v39, %v651_v32  ;;  %v1536_v38 = vpop.f32.mrb[49].mxu0  ;;  %vm939_vm1 = vcmp.lt.s32.totalorder %v889_v10, 798  ;;  %v891_v32 = vadd.s32 %v1822_v36, %v840_v13  ;;  %v846_v5 = vadd.s32 320, %v1820_v35 }
 0x15b   : > { %v654_v41 = vpop.f32.mrb[50].mxu0  ;;  %vm940_vm2 = vcmp.lt.s32.totalorder %v890_v19, 798  ;;  %v843_v38 = vadd.s32 296, %v1820_v35  ;;  %v1089_v30 = vsel %vm939_vm1, %v1899_v59, 0.0  ;;  %v847_v10 = vadd.s32 328, %v1820_v35 }
 0x15c   : > { %778 = vst [vmem:[%s1837_s25 + $0xc0] sm:$0xff] %v652_v37  ;;  %v1081_v44 = vsel %vm931_vm9, %v652_v37, 0.0  ;;  %v655_v45 = vadd.f32 %v1831_v39, %v654_v41  ;;  %v1537_v46 = vpop.f32.mrb[51].mxu0  ;;  %v1084_v39 = vsel %vm934_vm12, %v1851_v55, 0.0  ;;  %v1086_v55 = vsel %vm936_vm14, %v1869_v15, 0.0 }
 0x15d   : > { %v1130_v52 = vadd.f32 %v1129_v22, %v1081_v44  ;;  %v1186_v53 = vmul.f32 %v1081_v44, %v1081_v44  ;;  %v1189_v12 = vmul.f32 %v1084_v39, %v1084_v39  ;;  %v1190_v22 = vmul.f32 %v1085_v9, %v1085_v9 }
 0x15e   : > { %779 = vst [vmem:[%s1837_s25 + $0xc8] sm:$0xff] %v655_v45  ;;  %v1082_v58 = vsel %vm932_vm11, %v655_v45, 0.0  ;;  %v1088_v15 = vsel %vm938_vm0, %v1888_v42, 0.0  ;;  %v892_v41 = vadd.s32 %v1822_v36, %v841_v23  ;;  %v893_v45 = vadd.s32 %v1822_v36, %v842_v28 }
 0x15f   : > { %v1235_v63 = vadd.f32 %v1234_v29, %v1186_v53  ;;  %v1131_v1 = vadd.f32 %v1130_v52, %v1082_v58  ;;  %v1187_v2 = vmul.f32 %v1082_v58, %v1082_v58  ;;  %v1191_v29 = vmul.f32 %v1086_v55, %v1086_v55 }
 0x160   : > { %v844_v46 = vadd.s32 304, %v1820_v35  ;;  %v1193_v49 = vmul.f32 %v1088_v15, %v1088_v15  ;;  %vm941_vm3 = vcmp.lt.s32.totalorder %v891_v32, 798  ;;  %v1090_v42 = vsel %vm940_vm2, %v1907_v4, 0.0 }
 0x161   : > { %v1132_v8 = vadd.f32 %v1131_v1, %v1083_v54  ;;  %v1236_v48 = vadd.f32 %v1235_v63, %v1187_v2  ;;  %v894_v54 = vadd.s32 %v1822_v36, %v843_v38  ;;  %v1194_v57 = vmul.f32 %v1089_v30, %v1089_v30 }
 0x162   : > { %vm942_vm4 = vcmp.lt.s32.totalorder %v892_v41, 798  ;;  %v1091_v59 = vsel %vm941_vm3, %v1918_v21, 0.0  ;;  %vm943_vm5 = vcmp.lt.s32.totalorder %v893_v45, 798  ;;  %v895_v1 = vadd.s32 %v1822_v36, %v844_v46 }
 0x163   : > { %v1133_v17 = vadd.f32 %v1132_v8, %v1084_v39  ;;  %v1237_v18 = vadd.f32 %v1236_v48, %v1188_v7  ;;  %v1195_v2 = vmul.f32 %v1090_v42, %v1090_v42  ;;  %v1092_v4 = vsel %vm942_vm4, %v1926_v31, 0.0 }
 0x164   : > { %vm944_vm6 = vcmp.lt.s32.totalorder %v894_v54, 798  ;;  %v896_v7 = vadd.s32 %v1822_v36, %v845_v56  ;;  %v1196_v8 = vmul.f32 %v1091_v59, %v1091_v59  ;;  %v1093_v21 = vsel %vm943_vm5, %v1937_v51, 0.0 }
 0x165   : > { %v1134_v24 = vadd.f32 %v1133_v17, %v1085_v9  ;;  %v1238_v25 = vadd.f32 %v1237_v18, %v1189_v12  ;;  %vm945_vm7 = vcmp.lt.s32.totalorder %v895_v1, 798  ;;  %v848_v12 = vadd.s32 336, %v1820_v35 }
 0x166   : > { %v1197_v13 = vmul.f32 %v1092_v4, %v1092_v4  ;;  %v1094_v31 = vsel %vm944_vm6, %v1945_v62, 0.0  ;;  %vm946_vm8 = vcmp.lt.s32.totalorder %v896_v7, 798  ;;  %v849_v19 = vadd.s32 344, %v1820_v35 }
 0x167   : > { %v1135_v33 = vadd.f32 %v1134_v24, %v1086_v55  ;;  %v1239_v37 = vadd.f32 %v1238_v25, %v1190_v22  ;;  %v897_v55 = vadd.s32 %v1822_v36, %v846_v5  ;;  %v1198_v22 = vmul.f32 %v1093_v21, %v1093_v21 }
 0x168   : > { %v898_v25 = vadd.s32 %v1822_v36, %v847_v10  ;;  %v1095_v51 = vsel %vm945_vm7, %v1956_v16, 0.0  ;;  %v850_v28 = vadd.s32 352, %v1820_v35  ;;  %v1096_v62 = vsel %vm946_vm8, %v1964_v26, 0.0 }
 0x169   : > { %v1136_v43 = vadd.f32 %v1135_v33, %v1087_v6  ;;  %v1240_v44 = vadd.f32 %v1239_v37, %v1191_v29  ;;  %v899_v6 = vadd.s32 %v1822_v36, %v848_v12  ;;  %v1199_v29 = vmul.f32 %v1094_v31, %v1094_v31 }
 0x16a   : > { %vm947_vm9 = vcmp.lt.s32.totalorder %v897_v55, 798  ;;  %v900_v37 = vadd.s32 %v1822_v36, %v849_v19  ;;  %vm948_vm10 = vcmp.lt.s32.totalorder %v898_v25, 798  ;;  %v1201_v45 = vmul.f32 %v1096_v62, %v1096_v62 }
 0x16b   : > { %v1137_v52 = vadd.f32 %v1136_v43, %v1088_v15  ;;  %v1241_v53 = vadd.f32 %v1240_v44, %v1192_v40  ;;  %v851_v15 = vadd.s32 360, %v1820_v35  ;;  %v1200_v40 = vmul.f32 %v1095_v51, %v1095_v51 }
 0x16c   : > { %v1097_v16 = vsel %vm947_vm9, %v1975_v47, 0.0  ;;  %vm949_vm11 = vcmp.lt.s32.totalorder %v899_v6, 798  ;;  %v901_v43 = vadd.s32 %v1822_v36, %v850_v28  ;;  %v852_v46 = vadd.s32 368, %v1820_v35 }
 0x16d   : > { %v1242_v58 = vadd.f32 %v1241_v53, %v1193_v49  ;;  %v1138_v63 = vadd.f32 %v1137_v52, %v1089_v30  ;;  %v1098_v26 = vsel %vm948_vm10, %v1983_v60, 0.0  ;;  %vm950_vm12 = vcmp.lt.s32.totalorder %v900_v37, 798 }
 0x16e   : > { %v902_v49 = vadd.s32 %v1822_v36, %v851_v15  ;;  %v853_v52 = vadd.s32 376, %v1820_v35  ;;  %v1202_v54 = vmul.f32 %v1097_v16, %v1097_v16  ;;  %v854_v47 = vadd.s32 384, %v1820_v35 }
 0x16f   : > { %v1139_v39 = vadd.f32 %v1138_v63, %v1090_v42  ;;  %v1243_v3 = vadd.f32 %v1242_v58, %v1194_v57  ;;  %v1099_v56 = vsel %vm949_vm11, %v1994_v14, 0.0  ;;  %vm951_vm13 = vcmp.lt.s32.totalorder %v901_v43, 798 }
 0x170   : > { %v1203_v63 = vmul.f32 %v1098_v26, %v1098_v26  ;;  %v1100_v60 = vsel %vm950_vm12, %v2002_v27, 0.0  ;;  %vm952_vm14 = vcmp.lt.s32.totalorder %v902_v49, 798  ;;  %v904_v1 = vadd.s32 %v1822_v36, %v853_v52 }
 0x171   : > { %v1140_v48 = vadd.f32 %v1139_v39, %v1091_v59  ;;  %v1244_v9 = vadd.f32 %v1243_v3, %v1195_v2  ;;  %v903_v59 = vadd.s32 %v1822_v36, %v852_v46  ;;  %v855_v2 = vadd.s32 392, %v1820_v35 }
 0x172   : > { %v1204_v5 = vmul.f32 %v1099_v56, %v1099_v56  ;;  %v1101_v14 = vsel %vm951_vm13, %v2013_v50, 0.0  ;;  %vm954_vm0 = vcmp.lt.s32.totalorder %v904_v1, 798  ;;  %vm1267_vm3 = vcmp.eq.s32.totalorder %v1820_v35, 0 }
 0x173   : > { %v1141_v17 = vadd.f32 %v1140_v48, %v1092_v4  ;;  %v1245_v18 = vadd.f32 %v1244_v9, %v1196_v8  ;;  %v905_v4 = vadd.s32 %v1822_v36, %v854_v47  ;;  %v1205_v48 = vmul.f32 %v1100_v60, %v1100_v60 }
 0x174   : > { %vm953_vm15 = vcmp.lt.s32.totalorder %v903_v59, 798  ;;  %v1102_v9 = vsel %vm952_vm14, %v2021_v0, 0.0  ;;  %v906_v27 = vadd.s32 %v1822_v36, %v855_v2  ;;  %v1206_v12 = vmul.f32 %v1101_v14, %v1101_v14 }
 0x175   : > { %v1142_v23 = vadd.f32 %v1141_v17, %v1093_v21  ;;  %v1246_v24 = vadd.f32 %v1245_v18, %v1197_v13  ;;  %vm955_vm1 = vcmp.lt.s32.totalorder %v905_v4, 798  ;;  %v1103_v13 = vsel %vm953_vm15, %v2032_v20, 0.0 }
 0x176   : > { %v1207_v55 = vmul.f32 %v1102_v9, %v1102_v9  ;;  %v1104_v50 = vsel %vm954_vm0, %v2040_v34, 0.0  ;;  %v1208_v0 = vmul.f32 %v1103_v13, %v1103_v13  ;;  %vm956_vm2 = vcmp.lt.s32.totalorder %v906_v27, 798 }
 0x177   : > { %v1143_v32 = vadd.f32 %v1142_v23, %v1094_v31  ;;  %v1247_v33 = vadd.f32 %v1246_v24, %v1198_v22  ;;  %v1105_v31 = vsel %vm955_vm1, %v2052_v61, 0.0  ;;  %v1209_v24 = vmul.f32 %v1104_v50, %v1104_v50 }
 0x178   : > { %v1210_v25 = vmul.f32 %v1105_v31, %v1105_v31 }
 0x179   : > { %v1144_v38 = vadd.f32 %v1143_v32, %v1095_v51  ;;  %v1248_v41 = vadd.f32 %v1247_v33, %v1199_v29  ;;  %v1106_v51 = vsel %vm956_vm2, %v2061_v11, 0.0 }
 0x17a   : > { %v1211_v32 = vmul.f32 %v1106_v51, %v1106_v51 }
 0x17b   : > { %v1249_v44 = vadd.f32 %v1248_v41, %v1200_v40  ;;  %v1145_v30 = vadd.f32 %v1144_v38, %v1096_v62 }
 0x17d   : > { %v1250_v53 = vadd.f32 %v1249_v44, %v1201_v45  ;;  %v1146_v42 = vadd.f32 %v1145_v30, %v1097_v16 }
 0x17f   : > { %v1251_v57 = vadd.f32 %v1250_v53, %v1202_v54  ;;  %v1147_v58 = vadd.f32 %v1146_v42, %v1098_v26 }
 0x181   : > { %v1252_v39 = vadd.f32 %v1251_v57, %v1203_v63  ;;  %v1148_v3 = vadd.f32 %v1147_v58, %v1099_v56 }
 0x183   : > { %v1253_v7 = vadd.f32 %v1252_v39, %v1204_v5  ;;  %v1149_v8 = vadd.f32 %v1148_v3, %v1100_v60 }
 0x185   : > { %v1254_v10 = vadd.f32 %v1253_v7, %v1205_v48  ;;  %v1150_v21 = vadd.f32 %v1149_v8, %v1101_v14 }
 0x187   : > { %v1255_v17 = vadd.f32 %v1254_v10, %v1206_v12  ;;  %v1151_v18 = vadd.f32 %v1150_v21, %v1102_v9 }
 0x189   : > { %v1256_v19 = vadd.f32 %v1255_v17, %v1207_v55  ;;  %v1152_v22 = vadd.f32 %v1151_v18, %v1103_v13 }
 0x18b   : > { %v1257_v36 = vadd.f32 %v1256_v19, %v1208_v0  ;;  %v1153_v23 = vadd.f32 %v1152_v22, %v1104_v50 }
 0x18d   : > { %v1258_v20 = vadd.f32 %v1257_v36, %v1209_v24  ;;  %v1154_v6 = vadd.f32 %v1153_v23, %v1105_v31 }
 0x18f   : > { %v1259_v28 = vadd.f32 %v1258_v20, %v1210_v25  ;;  %v1155_v29 = vadd.f32 %v1154_v6, %v1106_v51 }
 0x191   : > { %v1156_v34 = vrot.slane %v1155_v29, 4  ;;  %v1260_v33 = vadd.f32 %v1259_v28, %v1211_v32 }
 0x193   : > { %v1157_v61 = vadd.f32 %v1156_v34, %v1155_v29  ;;  %v1261_v62 = vrot.slane %v1260_v33, 4 }
 0x195   : > { %v1158_v37 = vrot.slane %v1157_v61, 2  ;;  %v1262_v15 = vadd.f32 %v1261_v62, %v1260_v33 }
 0x197   : > { %v1159_v38 = vadd.f32 %v1158_v37, %v1157_v61  ;;  %v1263_v40 = vrot.slane %v1262_v15, 2 }
 0x199   : > { %v1160_v41 = vrot.slane %v1159_v38, 1  ;;  %v1264_v16 = vadd.f32 %v1263_v40, %v1262_v15 }
 0x19b   : > { %v1161_v11 = vadd.f32 %v1160_v41, %v1159_v38  ;;  %v1265_v43 = vrot.slane %v1264_v16, 1 }
 0x19d   : > { %v1266_v44 = vadd.f32 %v1265_v43, %v1264_v16  ;;  %v1270_v30 = vsel %vm1267_vm3, %v1161_v11, 0.0 }
 0x19e   : > { %1271 = vst [vmem:[%s244_s28] sm:$0xff] %v1270_v30 }
 0x19f   : > { %v1272_v45 = vsel %vm1267_vm3, %v1266_v44, 0.0 }
 0x1a0   : > { %1273 = vst [vmem:[%s248_s6] sm:$0xff] %v1272_v45 }
 0x1a1 PF: > { %s16_s18 = sadd.s32 1, %s1651_s18  }
 0x1a2   : > { %p13_p5 = scmp.ge.s32.totalorder %s16_s18, 4  }
 0x1a4   :  { %15 = sbr.rel (!%p13_p5) target bundleno = 1 (0x1), region = 86 }

</bundles_post_ra>
